<compile_context>
chip_gen: v7x
topology: tpu7x:2x2x1
jax: 0.10.0
libtpu: 0.0.40
codegen_flags: <defaults>
</compile_context>

<pallas_src>
import jax
import jax.numpy as jnp
from jax.experimental import pallas as pl
from jax.experimental.pallas import tpu as pltpu


_VMEM_WORKING_SET = 16 * 1024 * 1024   # double-buffered x + out tile budget
_VMEM_LIMIT = 32 * 1024 * 1024         # scoped VMEM limit passed to Mosaic
_MAX_TB = 2048                         # batch-tile cap (rows)


def _round_up(x, m):
    return (x + m - 1) // m * m


# ---------------------------------------------------------------------------
# Kernels
# ---------------------------------------------------------------------------
def _merger_kernel_2d(sm_ref, x_ref, o_ref):
    """128-aligned feature path.

    sm_ref: [1, H*F]  f32 softmax(weight), precomputed in the wrapper
    x_ref : [TB, H*F] input tile (batch rows dense on sublanes)
    o_ref : [TB, F]
    """
    fea = o_ref.shape[-1]
    n_head = x_ref.shape[-1] // fea
    # Lane-aligned per-head slices; f32 accumulate, H-1 VALU adds (no XLU).
    acc = sm_ref[:, 0:fea] * x_ref[:, 0:fea].astype(jnp.float32)
    for h in range(1, n_head):
        lo = h * fea
        acc = acc + sm_ref[:, lo:lo + fea] * x_ref[:, lo:lo + fea].astype(jnp.float32)
    o_ref[...] = acc.astype(o_ref.dtype)


def _merger_kernel_3d(sm_ref, x_ref, o_ref):
    """Fallback for fea_dim not a multiple of 128 (no pad / no extra HBM pass).

    sm_ref: [1, H, F]  f32
    x_ref : [TB, H, F]
    o_ref : [TB, F]
    """
    sm = sm_ref[...]                            # [1, H, F]
    x = x_ref[...].astype(jnp.float32)          # [TB, H, F]
    o_ref[...] = jnp.sum(sm * x, axis=1).astype(o_ref.dtype)


# ---------------------------------------------------------------------------
# Wrapper
# ---------------------------------------------------------------------------
def _choose_tb(bs, bytes_per_row):
    """bytes_per_row already counts both double-buffered copies (x + out)."""
    tb_max = max(8, _VMEM_WORKING_SET // max(1, bytes_per_row))
    tb_max = max(8, min(_MAX_TB, tb_max) // 8 * 8)
    # At least two (and an even number of) near-equal steps: both v7x
    # TensorCores get work via dimension_semantics=("parallel",) and the
    # pipeline has something to overlap on single-core chips.
    n_steps = max(2, pl.cdiv(bs, tb_max))
    if n_steps % 2:
        n_steps += 1
    tb = _round_up(pl.cdiv(bs, n_steps), 8)
    return max(8, min(tb, tb_max))


def merger_forward(weight, x):
    """weight: [1, head, fea_dim]; x: [bs, head, fea_dim] -> [bs, fea_dim]."""
    bs, head, fea_dim = x.shape

    if head == 1:
        # PyTorch branch: th.squeeze(x, dim=1) — pure layout glue, no kernel.
        return jnp.squeeze(x, axis=1)

    # softmax(weight) is O(head*fea): compute it once, exactly, in f32.
    sm = jax.nn.softmax(weight.astype(jnp.float32), axis=1)   # [1, H, F]

    # Tiny problems: sub-128-lane outputs / tiny batches -> per-call overhead
    # dominates; fused XLA is strictly faster than any Pallas launch.
    if fea_dim < 128 or bs < 64:
        out = jnp.sum(sm * x.astype(jnp.float32), axis=1)
        return out.astype(x.dtype)

    itemsize = jnp.dtype(x.dtype).itemsize
    compiler_params = pltpu.CompilerParams(
        dimension_semantics=("parallel",),
        vmem_limit_bytes=_VMEM_LIMIT)

    if fea_dim % 128 == 0:
        # Dense 2D layout: free reshape (contiguous dims collapse), no pad.
        x2 = x.reshape(bs, head * fea_dim)
        sm2 = sm.reshape(1, head * fea_dim)
        bytes_per_row = 2 * (head * fea_dim * itemsize + fea_dim * itemsize)
        tb = _choose_tb(bs, bytes_per_row)
        grid = (pl.cdiv(bs, tb),)
        return pl.pallas_call(
            _merger_kernel_2d,
            out_shape=jax.ShapeDtypeStruct((bs, fea_dim), x.dtype),
            grid_spec=pltpu.PrefetchScalarGridSpec(
                num_scalar_prefetch=0,
                grid=grid,
                in_specs=[
                    pl.BlockSpec((1, head * fea_dim), lambda i: (0, 0)),
                    pl.BlockSpec((tb, head * fea_dim), lambda i: (i, 0)),
                ],
                out_specs=pl.BlockSpec((tb, fea_dim), lambda i: (i, 0)),
            ),
            compiler_params=compiler_params,
        )(sm2, x2)

    # Non-128-multiple feature dim: 3D block whose trailing (head, fea) dims
    # equal the full array dims -> no pad, no output slice, no extra HBM pass.
    # Honest VMEM accounting: head pads to the sublane granule, fea to 128.
    sub = {1: 32, 2: 16, 4: 8}.get(itemsize, 8)
    head_pad = _round_up(head, sub)
    fea_lanes = _round_up(fea_dim, 128)
    bytes_per_row = 2 * (head_pad * fea_lanes * itemsize + fea_lanes * itemsize)
    tb = _choose_tb(bs, bytes_per_row)
    grid = (pl.cdiv(bs, tb),)
    return pl.pallas_call(
        _merger_kernel_3d,
        out_shape=jax.ShapeDtypeStruct((bs, fea_dim), x.dtype),
        grid_spec=pltpu.PrefetchScalarGridSpec(
            num_scalar_prefetch=0,
            grid=grid,
            in_specs=[
                pl.BlockSpec((1, head, fea_dim), lambda i: (0, 0, 0)),
                pl.BlockSpec((tb, head, fea_dim), lambda i: (i, 0, 0)),
            ],
            out_specs=pl.BlockSpec((tb, fea_dim), lambda i: (i, 0)),
        ),
        compiler_params=compiler_params,
    )(sm, x)


# ---------------------------------------------------------------------------
# Reference + tests
# ---------------------------------------------------------------------------
def _reference(weight, x):
    sm = jax.nn.softmax(weight.astype(jnp.float32), axis=1)
    return jnp.sum(sm * x.astype(jnp.float32), axis=1)


if __name__ == "__main__":
    keys = jax.random.split(jax.random.PRNGKey(0), 8)

    # ---- Test A: module-sized small shape (fused-XLA fallback path) ----
    bs, head, fea = 2, 4, 32
    w = jnp.ones((1, head, fea), jnp.float32) \
        + 0.1 * jax.random.normal(keys[0], (1, head, fea), jnp.float32)
    x = jax.random.normal(keys[1], (bs, head, fea), jnp.float32)
    out = jax.block_until_ready(merger_forward(w, x))
    assert out.shape == (bs, fea)
    assert jnp.allclose(out, _reference(w, x), atol=1e-5, rtol=1e-5)

    # ---- Test B: 2D Pallas path, 128-aligned features, 2 equal grid steps ----
    bs, head, fea = 1040, 4, 128
    w = jnp.ones((1, head, fea), jnp.float32) \
        + 0.1 * jax.random.normal(keys[2], (1, head, fea), jnp.float32)
    x = jax.random.normal(keys[3], (bs, head, fea), jnp.float32)
    out = jax.block_until_ready(merger_forward(w, x))
    assert out.shape == (bs, fea)
    assert jnp.allclose(out, _reference(w, x), atol=1e-5, rtol=1e-5)

    # ---- Test C: 3D Pallas path, fea not a multiple of 128 (no pad/slice) ----
    bs, head, fea = 256, 3, 160
    w = jnp.ones((1, head, fea), jnp.float32) \
        + 0.1 * jax.random.normal(keys[4], (1, head, fea), jnp.float32)
    x = jax.random.normal(keys[5], (bs, head, fea), jnp.float32)
    out = jax.block_until_ready(merger_forward(w, x))
    assert out.shape == (bs, fea)
    assert jnp.allclose(out, _reference(w, x), atol=1e-5, rtol=1e-5)

    # ---- Test D: bf16 inputs through the 2D Pallas path ----
    bs, head, fea = 512, 4, 128
    w = jnp.ones((1, head, fea), jnp.float32) \
        + 0.1 * jax.random.normal(keys[6], (1, head, fea), jnp.float32)
    xf = jax.random.normal(keys[7], (bs, head, fea), jnp.float32)
    out_bf = jax.block_until_ready(merger_forward(w, xf.astype(jnp.bfloat16)))
    assert out_bf.shape == (bs, fea)
    assert out_bf.dtype == jnp.bfloat16
    assert jnp.allclose(out_bf.astype(jnp.float32), _reference(w, xf),
                        atol=3e-2, rtol=3e-2)

    # ---- Test E: head == 1 branch (pure squeeze) ----
    x1 = jax.random.normal(keys[1], (4, 1, 96), jnp.float32)
    out1 = jax.block_until_ready(merger_forward(jnp.ones((1, 1, 96), jnp.float32), x1))
    assert out1.shape == (4, 96)
    assert jnp.allclose(out1, x1[:, 0, :])

    print("KERNEL_OK")
</pallas_src>

<mosaic_0001>
module attributes {stable_mosaic.version = 11 : i64} {
  func.func @_merger_kernel_2d(%arg0: i32, %arg1: memref<1x512xf32, #tpu.memory_space<vmem>>, %arg2: memref<520x512xf32, #tpu.memory_space<vmem>>, %arg3: memref<520x128xf32, #tpu.memory_space<vmem>>) attributes {dimension_semantics = [#tpu.dimension_semantics<parallel>], iteration_bounds = array<i64: 2>, scalar_prefetch = 0 : i64, scratch_operands = 0 : i64, tpu.core_type = #tpu.core_type<tc>, window_params = [{pipeline_mode = #tpu.pipeline_mode<synchronous>, transform_indices = @transform_0, window_bounds = array<i64: 1, 512>}, {transform_indices = @transform_1, window_bounds = array<i64: 520, 512>}, {transform_indices = @transform_2, window_bounds = array<i64: 520, 128>}]} {
    %c0 = arith.constant 0 : index
    %c0_0 = arith.constant 0 : index
    %0 = vector.load %arg1[%c0, %c0_0] : memref<1x512xf32, #tpu.memory_space<vmem>>, vector<1x128xf32>
    %c0_1 = arith.constant 0 : index
    %c0_2 = arith.constant 0 : index
    %1 = vector.load %arg2[%c0_1, %c0_2] : memref<520x512xf32, #tpu.memory_space<vmem>>, vector<520x128xf32>
    %2 = vector.broadcast %0 : vector<1x128xf32> to vector<520x128xf32>
    %3 = arith.mulf %2, %1 : vector<520x128xf32>
    %c0_3 = arith.constant 0 : index
    %c128 = arith.constant 128 : index
    %4 = vector.load %arg1[%c0_3, %c128] : memref<1x512xf32, #tpu.memory_space<vmem>>, vector<1x128xf32>
    %c0_4 = arith.constant 0 : index
    %c128_5 = arith.constant 128 : index
    %5 = vector.load %arg2[%c0_4, %c128_5] : memref<520x512xf32, #tpu.memory_space<vmem>>, vector<520x128xf32>
    %6 = vector.broadcast %4 : vector<1x128xf32> to vector<520x128xf32>
    %7 = arith.mulf %6, %5 : vector<520x128xf32>
    %8 = arith.addf %3, %7 : vector<520x128xf32>
    %c0_6 = arith.constant 0 : index
    %c256 = arith.constant 256 : index
    %9 = vector.load %arg1[%c0_6, %c256] : memref<1x512xf32, #tpu.memory_space<vmem>>, vector<1x128xf32>
    %c0_7 = arith.constant 0 : index
    %c256_8 = arith.constant 256 : index
    %10 = vector.load %arg2[%c0_7, %c256_8] : memref<520x512xf32, #tpu.memory_space<vmem>>, vector<520x128xf32>
    %11 = vector.broadcast %9 : vector<1x128xf32> to vector<520x128xf32>
    %12 = arith.mulf %11, %10 : vector<520x128xf32>
    %13 = arith.addf %8, %12 : vector<520x128xf32>
    %c0_9 = arith.constant 0 : index
    %c384 = arith.constant 384 : index
    %14 = vector.load %arg1[%c0_9, %c384] : memref<1x512xf32, #tpu.memory_space<vmem>>, vector<1x128xf32>
    %c0_10 = arith.constant 0 : index
    %c384_11 = arith.constant 384 : index
    %15 = vector.load %arg2[%c0_10, %c384_11] : memref<520x512xf32, #tpu.memory_space<vmem>>, vector<520x128xf32>
    %16 = vector.broadcast %14 : vector<1x128xf32> to vector<520x128xf32>
    %17 = arith.mulf %16, %15 : vector<520x128xf32>
    %18 = arith.addf %13, %17 : vector<520x128xf32>
    %c0_12 = arith.constant 0 : index
    %c0_13 = arith.constant 0 : index
    %19 = vector.load %arg3[%c0_12, %c0_13] : memref<520x128xf32, #tpu.memory_space<vmem>>, vector<520x128xf32>
    tpu.vector_store %arg3[%c0_12, %c0_13], %18 {strides = array<i32>} : memref<520x128xf32, #tpu.memory_space<vmem>>, vector<520x128xf32>,
    return
  }
  func.func @transform_0(%arg0: i32) -> (i32, i32) {
    %c0_i32 = arith.constant 0 : i32
    %c0_i32_0 = arith.constant 0 : i32
    %c0_i32_1 = arith.constant 0 : i32
    return %c0_i32, %c0_i32_0 : i32, i32
  }
  func.func @transform_1(%arg0: i32) -> (i32, i32) {
    %c0_i32 = arith.constant 0 : i32
    %c0_i32_0 = arith.constant 0 : i32
    return %arg0, %c0_i32 : i32, i32
  }
  func.func @transform_2(%arg0: i32) -> (i32, i32) {
    %c0_i32 = arith.constant 0 : i32
    %c0_i32_0 = arith.constant 0 : i32
    return %arg0, %c0_i32 : i32, i32
  }
}

</mosaic_0001>

<bundles_post_ra>
// kernel: tpu_custom_call.1
= control target key start
LH: loop header
LB: loop body
LE: loop exit
PB: predicated region body
PF: predicated region fallthrough
CT: control target
= control target key end

     0   :  { %7 = vsyncpa [#allocation3], 0  ;;  %s2131_s0 = inlined_call_operand.hbm [shape: f32[1,512], index: 0, kind: input, shape index: {}]   ;;  %s2132_s1 = inlined_call_operand.hbm [shape: f32[1040,512], index: 1, kind: input, shape index: {}]   ;;  %s2133_s2 = inlined_call_operand.hbm [shape: f32[1040,128], index: 2, kind: output, shape index: {}]  }
   0x1   :  { %8 = vsyncpa [#allocation6], 0 }
   0x2   :  { %10 = vsyncpa [#allocation6 + $0x1], 0 }
   0x3   :  { %11 = vsyncpa [#allocation4], 0 }
   0x4   :  { %13 = vsyncpa [#allocation4 + $0x1], 0  ;;  %s1324_s9 = smov 0   ;;  %s1326_s10 = smov 0  }
   0x5   :  { %s1328_s11 = smov 0   ;;  %s1330_s12 = smov 0  }
   0x6 LB: > { %s1345_s13 = sadd.s32 4294967295, %s1300_s12   ;;  %s1085_s14 = sadd.s32 4294967294, %s1300_s12   ;;  %s1300_s12 = sphi %s1330_s12, %s2158_s12   ;;  %s1296_s11 = sphi %s1328_s11, %s2157_s11   ;;  %s1292_s10 = sphi %s1326_s10, %s2156_s10   ;;  %s1288_s9 = sphi %s1324_s9, %s2155_s9  }
   0x7   : > { %s1349_s15 = sadd.s32 1, %s1300_s12   ;;  %s47_s16 = sadd.s32 1, %s1296_s11 }
   0x8   : > { %s44_s17 = ssub.s32 %s1300_s12, %s1349_s15  ;;  %p54_p0 = scmp.ne.s32.totalorder %s1296_s11, %s1292_s10 }
   0x9   : > { %p45_p1 = scmp.eq.s32.totalorder %s44_s17, 0  ;;  %p55_p2 = scmp.eq.s32.totalorder %s1300_s12, 0 }
   0xa   : > { %p60_p3 = scmp.ne.s32.totalorder %s1292_s10, %s1288_s9  ;;  %p2134_p4 = scmp.eq.s32.totalorder %s1345_s13, 0 }
   0xb   : > { %s1361_s18 = scalar_select %p45_p1, %s1296_s11, %s47_s16  }
   0xc   : > { %p1363_p5 = por %p55_p2, %p54_p0  ;;  %p1369_p6 = por %p2134_p4, %p60_p3 }
   0xd   : > { %p84_p7 = scmp.eq.s32.totalorder %s1345_s13, 1  ;;  %p90_p8 = scmp.eq.s32.totalorder %s1085_s14, 1 }
   0xe   : > { %s2140_s20 = scalar_select %p1369_p6, 1, 0 }
   0xf   : > { %p1086_p9 = scmp.ge.s32.totalorder %s1300_s12, 1  ;;  %p97_p10 = scmp.lt.s32.totalorder %s1300_s12, 3 }
  0x10   : > { %p1376_p11 = por %p84_p7, %p54_p0  ;;  %p1380_p12 = por %p90_p8, %p60_p3 }
  0x11   : > { %p1384_p13 = pnand %p1086_p9, %p97_p10  ;;  %s1302_s24 = smov [#allocation2]  }
  0x12   : > { %s2141_s21 = scalar_select %p1376_p11, 1, 0 }
  0x13   : > { %s2142_s22 = scalar_select %p1380_p12, 1, 0 }
  0x14   : > { %s2143_s23 = scalar_select %p1384_p13, 1, 0 }
  0x15   : > { %p1115_p2 = pneg %p1384_p13  ;;  %s110_s25 = sshll.u32 %s1302_s24, 4  ;;  %s111_s25 = int_to_ptr.vmem [resolvable:$true] %s110_s25 }
  0x16   : > { %p1128_p4 = scmp.lt.s32.totalorder %s1300_s12, 2  ;;  %p2144_p0 = scmp.eq.s32.totalorder %s1345_s13, 0 }
  0x17   : > { %s121_s27 = sand.u32 1, %s1296_s11   ;;  %s1172_s4 = scalar_lea.hbm %s2131_s0, 64 }
  0x18   : > { %p1394_p7 = pnand %p1115_p2, %p2144_p0  ;;  %p1401_p3 = pnand %p1128_p4, %p1363_p5 }
  0x19   : > { %s1104_s29 = smul.u32 2080, %s121_s27  ;;  %p1173_p8 = scmp.ne.s32.totalorder %s2131_s0, %s1172_s4 }
  0x1a   : > { %s2146_s28 = scalar_select %p1401_p3, 1, 0 }
  0x1b   : > { %p1174_p9 = pneg %p1394_p7  ;;  %p1179_p4 = scmp.lt.u32.totalorder %s1172_s4, %s2131_s0 }
  0x1d   : > { %p1175_p10 = pnand %p1174_p9, %p1173_p8 }
  0x1f   : > { %p1176_p2 = pneg %p1175_p10 }
  0x21   : > { %p1181_p5 = pnand %p1179_p4, %p1176_p2 }
  0x23   : > { %1184 = shalt.err (!%p1181_p5)
}
  0x24   : > { %s1185_s14 = scalar_lea.vmem %s111_s25, 64  ;;  %p1193_p11 = scmp.lt.s32.totalorder %s111_s25, %s111_s25 }
  0x25   : > { %p1186_p0 = scmp.ne.s32.totalorder %s111_s25, %s1185_s14  ;;  %p1194_p6 = scmp.lt.s32.totalorder %s1185_s14, %s1185_s14 }
  0x27   : > { %p1188_p1 = pnand %p1186_p0, %p1174_p9  ;;  %p1195_p13 = por %p1194_p6, %p1193_p11 }
  0x29   : > { %p1189_p12 = pneg %p1188_p1 }
  0x2b   : > { %p1196_p3 = pnand %p1195_p13, %p1189_p12 }
  0x2d   : > { %1199 = shalt.err (!%p1196_p3)
}
  0x2e   : > { %1118 = dma.hbm_to_vmem [thread:$0]  (!%p1394_p7), %s2131_s0, 64, %s111_s25, [#allocation3]  }
  0x2f   : > { %s1103_s19 = smul.u32 33280, %s1300_s12  ;;  %s125_s24 = scalar_lea.vmem [#allocation5], %s1104_s29 }
  0x30   : > { %s133_s30 = sshll.u32 %s125_s24, 4  ;;  %s1429_s26 = scalar_lea.sflag [#allocation6], %s121_s27  ;;  %s1422_s30 = int_to_ptr.vmem [resolvable:$true] %s133_s30 }
  0x31   : > { %s1427_s5 = scalar_lea.hbm %s2132_s1, %s1103_s19  ;;  %p2147_p11 = scmp.ne.s32.totalorder %s2146_s28, 0 }
  0x32   : > { %s1200_s6 = scalar_lea.hbm %s1427_s5, 33280  ;;  %s1205_s7 = scalar_lea.hbm %s2132_s1, 66560 }
  0x33   : > { %p1201_p6 = scmp.ne.s32.totalorder %s1427_s5, %s1200_s6  ;;  %p1202_p12 = pneg %p2147_p11 }
  0x34   : > { %p1206_p7 = scmp.lt.u32.totalorder %s1427_s5, %s2132_s1  ;;  %p1207_p3 = scmp.lt.u32.totalorder %s1205_s7, %s1200_s6 }
  0x35   : > { %p1203_p13 = pnand %p1202_p12, %p1201_p6  ;;  %p1209_p9 = scmp.lt.u32.totalorder %s1200_s6, %s1427_s5 }
  0x36   : > { %p1208_p8 = por %p1207_p3, %p1206_p7 }
  0x37   : > { %p1204_p1 = pneg %p1203_p13 }
  0x38   : > { %p1210_p10 = por %p1209_p9, %p1208_p8 }
  0x3a   : > { %p1211_p2 = pnand %p1210_p10, %p1204_p1 }
  0x3c   : > { %1214 = shalt.err (!%p1211_p2)
}
  0x3d   : > { %s1215_s27 = scalar_lea.vmem %s1422_s30, 33280  ;;  %s1303_s16 = smov [#allocation5]  }
  0x3e   : > { %p1216_p4 = scmp.ne.s32.totalorder %s1422_s30, %s1215_s27  ;;  %s1220_s17 = sshll.u32 %s1303_s16, 4  ;;  %s1221_s17 = int_to_ptr.vmem [resolvable:$false] %s1220_s17 }
  0x3f   : > { %s1222_s19 = scalar_lea.vmem %s1221_s17, 66560  ;;  %p1223_p6 = scmp.lt.s32.totalorder %s1422_s30, %s1221_s17 }
  0x40   : > { %p1218_p5 = pnand %p1216_p4, %p1202_p12  ;;  %p1224_p13 = scmp.lt.s32.totalorder %s1222_s19, %s1215_s27 }
  0x42   : > { %p1219_p0 = pneg %p1218_p5  ;;  %p1225_p7 = por %p1224_p13, %p1223_p6 }
  0x44   : > { %p1226_p3 = pnand %p1225_p7, %p1219_p0 }
  0x46   : > { %1229 = shalt.err (!%p1226_p3)
}
  0x47   : > { %s1304_s24 = smov 512   ;;  %s1305_s3 = smov 32  }
  0x48   : > { %1122 = dma.hbm_to_vmem [thread:$0]  (!%p2147_p11), %s1427_s5, 33280, %s1422_s30, %s1429_s26, %s1304_s24, %s1304_s24, %s1305_s3  }
  0x49   : > { %p2148_p12 = scmp.ne.s32.totalorder %s2143_s23, 0 }
  0x4a   : > { %p2149_p1 = scmp.eq.s32.totalorder (!%p2148_p12), %s1345_s13, 0 }
  0x4b   : > { %145 = sbr.rel (%p2148_p12) target bundleno = 225 (0xe1), region = 28 }
  0x52   : > { %1275 = dma.done.wait (%p2149_p1), [#allocation3], 64   ;;  %p2150_p8 = pmov %p2149_p1 }
  0x53   : > { %s1464_s4 = sand.u32 1, %s1292_s10   ;;  %p2151_p11 = scmp.ne.s32.totalorder %s2140_s20, 0 }
  0x54   : > { %1277 = vsyncadd (%p2150_p8), [#allocation3], 4294967232  ;;  %s1105_s6 = smul.u32 2080, %s1464_s4  ;;  %s152_s25 = scalar_lea.sflag [#allocation6], %s1464_s4 }
  0x56   : > { %s1468_s29 = scalar_lea.vmem [#allocation5], %s1105_s6 }
  0x57   : > { %1279 = dma.done.wait (%p2151_p11), %s152_s25, 33280  }
  0x58   : > { %1281 = vsyncadd (%p2151_p11), %s152_s25, 4294934016  ;;  %v1474_v0 = vld [vmem:[#allocation2] ss:$0 sm:$0xff]  ;;  %v179_v1 = vld [vmem:[%s1468_s29] sm:$0xff]  ;;  %s1106_s20 = smul.u32 520, %s1464_s4  ;;  %p2152_p10 = scmp.ne.s32.totalorder %s2141_s21, 0 }
  0x59   : > { %v1477_v2 = vld [vmem:[#allocation2 + $0x1] ss:$0 sm:$0xff]  ;;  %v250_v3 = vmul.f32 %v1474_v0, %v179_v1  ;;  %v316_v4 = vld [vmem:[%s1468_s29 + $0x8] sm:$0xff]  ;;  %v1481_v5 = vld [vmem:[#allocation2 + $0x2] ss:$0 sm:$0xff]  ;;  %s1102_s28 = smul.u32 8320, %s1345_s13 }
  0x5a   : > { %v518_v6 = vld [vmem:[%s1468_s29 + $0x10] sm:$0xff]  ;;  %v387_v7 = vmul.f32 %v1477_v2, %v316_v4  ;;  %v1486_v9 = vld [vmem:[#allocation2 + $0x3] ss:$0 sm:$0xff]  ;;  %v180_v11 = vld [vmem:[%s1468_s29 + $0x20] sm:$0xff]  ;;  %s1531_s23 = scalar_lea.vmem [#allocation7], %s1106_s20  ;;  %s987_s13 = scalar_lea.sflag [#allocation4], %s1464_s4 }
  0x5b   : > { %v589_v8 = vmul.f32 %v1481_v5, %v518_v6  ;;  %v720_v10 = vld [vmem:[%s1468_s29 + $0x18] sm:$0xff]  ;;  %v251_v12 = vmul.f32 %v1474_v0, %v180_v11  ;;  %v317_v13 = vld [vmem:[%s1468_s29 + $0x28] sm:$0xff]  ;;  %v519_v14 = vld [vmem:[%s1468_s29 + $0x30] sm:$0xff]  ;;  %s1000_s30 = sshll.u32 %s1531_s23, 4  ;;  %s2083_s7 = scalar_lea.hbm %s2133_s2, %s1102_s28  ;;  %s2085_s30 = int_to_ptr.vmem [resolvable:$true] %s1000_s30 }
  0x5c   : > { %v721_v15 = vld [vmem:[%s1468_s29 + $0x38] sm:$0xff]  ;;  %v452_v16 = vadd.f32 %v387_v7, %v250_v3  ;;  %v791_v17 = vmul.f32 %v1486_v9, %v720_v10  ;;  %v388_v18 = vmul.f32 %v1477_v2, %v317_v13  ;;  %v590_v19 = vmul.f32 %v1481_v5, %v519_v14  ;;  %v181_v20 = vld [vmem:[%s1468_s29 + $0x40] sm:$0xff]  ;;  %v318_v21 = vld [vmem:[%s1468_s29 + $0x48] sm:$0xff]  ;;  %s1230_s8 = scalar_lea.vmem %s2085_s30, 8320  ;;  %s1306_s14 = smov [#allocation7]  }
  0x5d   : > { %v520_v22 = vld [vmem:[%s1468_s29 + $0x50] sm:$0xff]  ;;  %v792_v23 = vmul.f32 %v1486_v9, %v721_v15  ;;  %v252_v24 = vmul.f32 %v1474_v0, %v181_v20  ;;  %v389_v25 = vmul.f32 %v1477_v2, %v318_v21  ;;  %v722_v27 = vld [vmem:[%s1468_s29 + $0x58] sm:$0xff]  ;;  %v182_v28 = vld [vmem:[%s1468_s29 + $0x60] sm:$0xff]  ;;  %p1231_p9 = scmp.ne.s32.totalorder %s2085_s30, %s1230_s8  ;;  %s1234_s27 = sshll.u32 %s1306_s14, 4  ;;  %s1235_s27 = int_to_ptr.vmem [resolvable:$false] %s1234_s27 }
  0x5e   : > { %v591_v26 = vmul.f32 %v1481_v5, %v520_v22  ;;  %v319_v29 = vld [vmem:[%s1468_s29 + $0x68] sm:$0xff]  ;;  %v654_v30 = vadd.f32 %v589_v8, %v452_v16  ;;  %v453_v31 = vadd.f32 %v388_v18, %v251_v12  ;;  %v793_v32 = vmul.f32 %v1486_v9, %v722_v27  ;;  %v521_v34 = vld [vmem:[%s1468_s29 + $0x70] sm:$0xff]  ;;  %v723_v35 = vld [vmem:[%s1468_s29 + $0x78] sm:$0xff]  ;;  %s1236_s16 = scalar_lea.vmem %s1235_s27, 16640  ;;  %p1237_p5 = scmp.lt.s32.totalorder %s2085_s30, %s1235_s27 }
  0x5f   : > { %v253_v33 = vmul.f32 %v1474_v0, %v182_v28  ;;  %v183_v36 = vld [vmem:[%s1468_s29 + $0x80] sm:$0xff]  ;;  %v454_v37 = vadd.f32 %v389_v25, %v252_v24  ;;  %v390_v38 = vmul.f32 %v1477_v2, %v319_v29  ;;  %v592_v39 = vmul.f32 %v1481_v5, %v521_v34  ;;  %v320_v41 = vld [vmem:[%s1468_s29 + $0x88] sm:$0xff]  ;;  %v522_v42 = vld [vmem:[%s1468_s29 + $0x90] sm:$0xff]  ;;  %p1232_p2 = pnand %p1231_p9, %p2152_p10  ;;  %p1238_p0 = scmp.lt.s32.totalorder %s1236_s16, %s1230_s8 }
  0x60   : > { %v794_v40 = vmul.f32 %v1486_v9, %v723_v35  ;;  %v724_v43 = vld [vmem:[%s1468_s29 + $0x98] sm:$0xff]  ;;  %v856_v44 = vadd.f32 %v791_v17, %v654_v30  ;;  %v655_v45 = vadd.f32 %v590_v19, %v453_v31  ;;  %v254_v46 = vmul.f32 %v1474_v0, %v183_v36  ;;  %v184_v48 = vld [vmem:[%s1468_s29 + $0xa0] sm:$0xff]  ;;  %v321_v49 = vld [vmem:[%s1468_s29 + $0xa8] sm:$0xff] }
  0x61   : > { %v391_v47 = vmul.f32 %v1477_v2, %v320_v41  ;;  %v523_v50 = vld [vmem:[%s1468_s29 + $0xb0] sm:$0xff]  ;;  %v656_v51 = vadd.f32 %v591_v26, %v454_v37  ;;  %v455_v52 = vadd.f32 %v390_v38, %v253_v33  ;;  %v593_v53 = vmul.f32 %v1481_v5, %v522_v42  ;;  %v725_v55 = vld [vmem:[%s1468_s29 + $0xb8] sm:$0xff]  ;;  %v185_v56 = vld [vmem:[%s1468_s29 + $0xc0] sm:$0xff]  ;;  %p1233_p4 = pneg %p1232_p2  ;;  %p1239_p6 = por %p1238_p0, %p1237_p5 }
  0x62   : > { %v795_v54 = vmul.f32 %v1486_v9, %v724_v43  ;;  %v322_v57 = vld [vmem:[%s1468_s29 + $0xc8] sm:$0xff]  ;;  %921 = vst [vmem:[%s1531_s23] sm:$0xff] %v856_v44  ;;  %v857_v58 = vadd.f32 %v792_v23, %v655_v45  ;;  %v255_v60 = vmul.f32 %v1474_v0, %v184_v48  ;;  %v392_v61 = vmul.f32 %v1477_v2, %v321_v49  ;;  %v524_v62 = vld [vmem:[%s1468_s29 + $0xd0] sm:$0xff]  ;;  %v726_v63 = vld [vmem:[%s1468_s29 + $0xd8] sm:$0xff] }
  0x63   : > { %v456_v59 = vadd.f32 %v391_v47, %v254_v46  ;;  %v186_v1 = vld [vmem:[%s1468_s29 + $0xe0] sm:$0xff]  ;;  %v858_v3 = vadd.f32 %v793_v32, %v656_v51  ;;  %v657_v4 = vadd.f32 %v592_v39, %v455_v52  ;;  %v594_v6 = vmul.f32 %v1481_v5, %v523_v50  ;;  %v323_v8 = vld [vmem:[%s1468_s29 + $0xe8] sm:$0xff]  ;;  %v525_v10 = vld [vmem:[%s1468_s29 + $0xf0] sm:$0xff]  ;;  %p1240_p13 = pnand %p1239_p6, %p1233_p4 }
  0x64   : > { %v796_v7 = vmul.f32 %v1486_v9, %v725_v55  ;;  %922 = vst [vmem:[%s1531_s23 + $0x8] sm:$0xff] %v857_v58  ;;  %v457_v12 = vadd.f32 %v392_v61, %v255_v60  ;;  %v256_v13 = vmul.f32 %v1474_v0, %v185_v56  ;;  %v393_v14 = vmul.f32 %v1477_v2, %v322_v57  ;;  %v727_v15 = vld [vmem:[%s1468_s29 + $0xf8] sm:$0xff]  ;;  %v187_v16 = vld [vmem:[%s1468_s29 + $0x100] sm:$0xff]  ;;  %v324_v17 = vld [vmem:[%s1468_s29 + $0x108] sm:$0xff] }
  0x65   : > { %v658_v11 = vadd.f32 %v593_v53, %v456_v59  ;;  %923 = vst [vmem:[%s1531_s23 + $0x10] sm:$0xff] %v858_v3  ;;  %v859_v18 = vadd.f32 %v794_v40, %v657_v4  ;;  %v595_v19 = vmul.f32 %v1481_v5, %v524_v62  ;;  %v797_v20 = vmul.f32 %v1486_v9, %v726_v63  ;;  %v526_v22 = vld [vmem:[%s1468_s29 + $0x110] sm:$0xff]  ;;  %v728_v27 = vld [vmem:[%s1468_s29 + $0x118] sm:$0xff]  ;;  %v188_v28 = vld [vmem:[%s1468_s29 + $0x120] sm:$0xff] }
  0x66   : > { %v257_v21 = vmul.f32 %v1474_v0, %v186_v1  ;;  %v659_v24 = vadd.f32 %v594_v6, %v457_v12  ;;  %v458_v25 = vadd.f32 %v393_v14, %v256_v13  ;;  %v394_v26 = vmul.f32 %v1477_v2, %v323_v8  ;;  %v325_v29 = vld [vmem:[%s1468_s29 + $0x128] sm:$0xff]  ;;  %v527_v34 = vld [vmem:[%s1468_s29 + $0x130] sm:$0xff]  ;;  %v729_v35 = vld [vmem:[%s1468_s29 + $0x138] sm:$0xff] }
  0x67   : > { %v860_v23 = vadd.f32 %v795_v54, %v658_v11  ;;  %924 = vst [vmem:[%s1531_s23 + $0x18] sm:$0xff] %v859_v18  ;;  %v596_v30 = vmul.f32 %v1481_v5, %v525_v10  ;;  %v798_v31 = vmul.f32 %v1486_v9, %v727_v15  ;;  %v258_v32 = vmul.f32 %v1474_v0, %v187_v16  ;;  %v189_v40 = vld [vmem:[%s1468_s29 + $0x140] sm:$0xff]  ;;  %v326_v41 = vld [vmem:[%s1468_s29 + $0x148] sm:$0xff]  ;;  %v528_v46 = vld [vmem:[%s1468_s29 + $0x150] sm:$0xff] }
  0x68   : > { %v395_v33 = vmul.f32 %v1477_v2, %v324_v17  ;;  %v861_v36 = vadd.f32 %v796_v7, %v659_v24  ;;  %v660_v37 = vadd.f32 %v595_v19, %v458_v25  ;;  %v459_v38 = vadd.f32 %v394_v26, %v257_v21  ;;  %v730_v47 = vld [vmem:[%s1468_s29 + $0x158] sm:$0xff]  ;;  %v190_v48 = vld [vmem:[%s1468_s29 + $0x160] sm:$0xff]  ;;  %v327_v53 = vld [vmem:[%s1468_s29 + $0x168] sm:$0xff] }
  0x69   : > { %925 = vst [vmem:[%s1531_s23 + $0x20] sm:$0xff] %v860_v23  ;;  %v597_v39 = vmul.f32 %v1481_v5, %v526_v22  ;;  %v799_v43 = vmul.f32 %v1486_v9, %v728_v27  ;;  %v259_v44 = vmul.f32 %v1474_v0, %v188_v28  ;;  %v396_v45 = vmul.f32 %v1477_v2, %v325_v29  ;;  %v529_v54 = vld [vmem:[%s1468_s29 + $0x170] sm:$0xff]  ;;  %v731_v59 = vld [vmem:[%s1468_s29 + $0x178] sm:$0xff]  ;;  %v191_v60 = vld [vmem:[%s1468_s29 + $0x180] sm:$0xff] }
  0x6a   : > { %v460_v42 = vadd.f32 %v395_v33, %v258_v32  ;;  %926 = vst [vmem:[%s1531_s23 + $0x28] sm:$0xff] %v861_v36  ;;  %v862_v49 = vadd.f32 %v797_v20, %v660_v37  ;;  %v661_v50 = vadd.f32 %v596_v30, %v459_v38  ;;  %v598_v51 = vmul.f32 %v1481_v5, %v527_v34  ;;  %v328_v61 = vld [vmem:[%s1468_s29 + $0x188] sm:$0xff]  ;;  %v530_v4 = vld [vmem:[%s1468_s29 + $0x190] sm:$0xff]  ;;  %v732_v11 = vld [vmem:[%s1468_s29 + $0x198] sm:$0xff] }
  0x6b   : > { %v800_v52 = vmul.f32 %v1486_v9, %v729_v35  ;;  %v461_v56 = vadd.f32 %v396_v45, %v259_v44  ;;  %v260_v57 = vmul.f32 %v1474_v0, %v189_v40  ;;  %v397_v58 = vmul.f32 %v1477_v2, %v326_v41  ;;  %v192_v12 = vld [vmem:[%s1468_s29 + $0x1a0] sm:$0xff]  ;;  %v329_v13 = vld [vmem:[%s1468_s29 + $0x1a8] sm:$0xff]  ;;  %v531_v18 = vld [vmem:[%s1468_s29 + $0x1b0] sm:$0xff] }
  0x6c   : > { %v662_v55 = vadd.f32 %v597_v39, %v460_v42  ;;  %927 = vst [vmem:[%s1531_s23 + $0x30] sm:$0xff] %v862_v49  ;;  %v863_v62 = vadd.f32 %v798_v31, %v661_v50  ;;  %v599_v63 = vmul.f32 %v1481_v5, %v528_v46  ;;  %v801_v1 = vmul.f32 %v1486_v9, %v730_v47  ;;  %v733_v19 = vld [vmem:[%s1468_s29 + $0x1b8] sm:$0xff]  ;;  %v193_v24 = vld [vmem:[%s1468_s29 + $0x1c0] sm:$0xff]  ;;  %v330_v25 = vld [vmem:[%s1468_s29 + $0x1c8] sm:$0xff] }
  0x6d   : > { %v261_v3 = vmul.f32 %v1474_v0, %v190_v48  ;;  %v663_v7 = vadd.f32 %v598_v51, %v461_v56  ;;  %v462_v8 = vadd.f32 %v397_v58, %v260_v57  ;;  %v398_v10 = vmul.f32 %v1477_v2, %v327_v53  ;;  %v532_v30 = vld [vmem:[%s1468_s29 + $0x1d0] sm:$0xff]  ;;  %v734_v31 = vld [vmem:[%s1468_s29 + $0x1d8] sm:$0xff]  ;;  %v194_v32 = vld [vmem:[%s1468_s29 + $0x1e0] sm:$0xff] }
  0x6e   : > { %v864_v6 = vadd.f32 %v799_v43, %v662_v55  ;;  %928 = vst [vmem:[%s1531_s23 + $0x38] sm:$0xff] %v863_v62  ;;  %v600_v14 = vmul.f32 %v1481_v5, %v529_v54  ;;  %v802_v15 = vmul.f32 %v1486_v9, %v731_v59  ;;  %v262_v16 = vmul.f32 %v1474_v0, %v191_v60  ;;  %v331_v37 = vld [vmem:[%s1468_s29 + $0x1e8] sm:$0xff]  ;;  %v533_v38 = vld [vmem:[%s1468_s29 + $0x1f0] sm:$0xff]  ;;  %v735_v43 = vld [vmem:[%s1468_s29 + $0x1f8] sm:$0xff] }
  0x6f   : > { %v399_v17 = vmul.f32 %v1477_v2, %v328_v61  ;;  %v865_v20 = vadd.f32 %v800_v52, %v663_v7  ;;  %v664_v21 = vadd.f32 %v599_v63, %v462_v8  ;;  %v463_v22 = vadd.f32 %v398_v10, %v261_v3  ;;  %v195_v44 = vld [vmem:[%s1468_s29 + $0x200] sm:$0xff]  ;;  %v332_v45 = vld [vmem:[%s1468_s29 + $0x208] sm:$0xff]  ;;  %v534_v50 = vld [vmem:[%s1468_s29 + $0x210] sm:$0xff] }
  0x70   : > { %929 = vst [vmem:[%s1531_s23 + $0x40] sm:$0xff] %v864_v6  ;;  %v601_v23 = vmul.f32 %v1481_v5, %v530_v4  ;;  %v803_v27 = vmul.f32 %v1486_v9, %v732_v11  ;;  %v263_v28 = vmul.f32 %v1474_v0, %v192_v12  ;;  %v400_v29 = vmul.f32 %v1477_v2, %v329_v13  ;;  %v736_v55 = vld [vmem:[%s1468_s29 + $0x218] sm:$0xff]  ;;  %v196_v56 = vld [vmem:[%s1468_s29 + $0x220] sm:$0xff]  ;;  %v333_v57 = vld [vmem:[%s1468_s29 + $0x228] sm:$0xff] }
  0x71   : > { %v464_v26 = vadd.f32 %v399_v17, %v262_v16  ;;  %930 = vst [vmem:[%s1531_s23 + $0x48] sm:$0xff] %v865_v20  ;;  %v866_v33 = vadd.f32 %v801_v1, %v664_v21  ;;  %v665_v34 = vadd.f32 %v600_v14, %v463_v22  ;;  %v602_v35 = vmul.f32 %v1481_v5, %v531_v18  ;;  %v535_v62 = vld [vmem:[%s1468_s29 + $0x230] sm:$0xff]  ;;  %v737_v63 = vld [vmem:[%s1468_s29 + $0x238] sm:$0xff]  ;;  %v197_v7 = vld [vmem:[%s1468_s29 + $0x240] sm:$0xff] }
  0x72   : > { %v804_v36 = vmul.f32 %v1486_v9, %v733_v19  ;;  %v465_v40 = vadd.f32 %v400_v29, %v263_v28  ;;  %v264_v41 = vmul.f32 %v1474_v0, %v193_v24  ;;  %v401_v42 = vmul.f32 %v1477_v2, %v330_v25  ;;  %v334_v8 = vld [vmem:[%s1468_s29 + $0x248] sm:$0xff]  ;;  %v536_v14 = vld [vmem:[%s1468_s29 + $0x250] sm:$0xff]  ;;  %v198_v16 = vld [vmem:[%s1468_s29 + $0x260] sm:$0xff] }
  0x73   : > { %v666_v39 = vadd.f32 %v601_v23, %v464_v26  ;;  %931 = vst [vmem:[%s1531_s23 + $0x50] sm:$0xff] %v866_v33  ;;  %v867_v46 = vadd.f32 %v802_v15, %v665_v34  ;;  %v603_v47 = vmul.f32 %v1481_v5, %v532_v30  ;;  %v805_v48 = vmul.f32 %v1486_v9, %v734_v31  ;;  %v738_v15 = vld [vmem:[%s1468_s29 + $0x258] sm:$0xff]  ;;  %v335_v21 = vld [vmem:[%s1468_s29 + $0x268] sm:$0xff]  ;;  %v537_v22 = vld [vmem:[%s1468_s29 + $0x270] sm:$0xff] }
  0x74   : > { %v265_v49 = vmul.f32 %v1474_v0, %v194_v32  ;;  %v667_v52 = vadd.f32 %v602_v35, %v465_v40  ;;  %v466_v53 = vadd.f32 %v401_v42, %v264_v41  ;;  %v402_v54 = vmul.f32 %v1477_v2, %v331_v37  ;;  %v199_v28 = vld [vmem:[%s1468_s29 + $0x280] sm:$0xff]  ;;  %v336_v29 = vld [vmem:[%s1468_s29 + $0x288] sm:$0xff]  ;;  %v538_v34 = vld [vmem:[%s1468_s29 + $0x290] sm:$0xff] }
  0x75   : > { %v868_v51 = vadd.f32 %v803_v27, %v666_v39  ;;  %932 = vst [vmem:[%s1531_s23 + $0x58] sm:$0xff] %v867_v46  ;;  %v604_v58 = vmul.f32 %v1481_v5, %v533_v38  ;;  %v806_v59 = vmul.f32 %v1486_v9, %v735_v43  ;;  %v266_v60 = vmul.f32 %v1474_v0, %v195_v44  ;;  %v739_v27 = vld [vmem:[%s1468_s29 + $0x278] sm:$0xff]  ;;  %v200_v40 = vld [vmem:[%s1468_s29 + $0x2a0] sm:$0xff]  ;;  %v337_v41 = vld [vmem:[%s1468_s29 + $0x2a8] sm:$0xff] }
  0x76   : > { %v403_v61 = vmul.f32 %v1477_v2, %v332_v45  ;;  %v869_v1 = vadd.f32 %v804_v36, %v667_v52  ;;  %v668_v3 = vadd.f32 %v603_v47, %v466_v53  ;;  %v467_v4 = vadd.f32 %v402_v54, %v265_v49  ;;  %v740_v39 = vld [vmem:[%s1468_s29 + $0x298] sm:$0xff]  ;;  %v539_v46 = vld [vmem:[%s1468_s29 + $0x2b0] sm:$0xff]  ;;  %v201_v52 = vld [vmem:[%s1468_s29 + $0x2c0] sm:$0xff] }
  0x77   : > { %933 = vst [vmem:[%s1531_s23 + $0x60] sm:$0xff] %v868_v51  ;;  %v605_v6 = vmul.f32 %v1481_v5, %v534_v50  ;;  %v807_v11 = vmul.f32 %v1486_v9, %v736_v55  ;;  %v267_v12 = vmul.f32 %v1474_v0, %v196_v56  ;;  %v404_v13 = vmul.f32 %v1477_v2, %v333_v57  ;;  %v741_v47 = vld [vmem:[%s1468_s29 + $0x2b8] sm:$0xff]  ;;  %v338_v53 = vld [vmem:[%s1468_s29 + $0x2c8] sm:$0xff] }
  0x78   : > { %v468_v10 = vadd.f32 %v403_v61, %v266_v60  ;;  %934 = vst [vmem:[%s1531_s23 + $0x68] sm:$0xff] %v869_v1  ;;  %v870_v17 = vadd.f32 %v805_v48, %v668_v3  ;;  %v669_v18 = vadd.f32 %v604_v58, %v467_v4  ;;  %v606_v19 = vmul.f32 %v1481_v5, %v535_v62  ;;  %v540_v58 = vld [vmem:[%s1468_s29 + $0x2d0] sm:$0xff]  ;;  %v202_v60 = vld [vmem:[%s1468_s29 + $0x2e0] sm:$0xff]  ;;  %v339_v3 = vld [vmem:[%s1468_s29 + $0x2e8] sm:$0xff] }
  0x79   : > { %v808_v20 = vmul.f32 %v1486_v9, %v737_v63  ;;  %v469_v24 = vadd.f32 %v404_v13, %v267_v12  ;;  %v268_v25 = vmul.f32 %v1474_v0, %v197_v7  ;;  %v405_v26 = vmul.f32 %v1477_v2, %v334_v8  ;;  %v541_v4 = vld [vmem:[%s1468_s29 + $0x2f0] sm:$0xff]  ;;  %v203_v12 = vld [vmem:[%s1468_s29 + $0x300] sm:$0xff]  ;;  %v340_v13 = vld [vmem:[%s1468_s29 + $0x308] sm:$0xff] }
  0x7a   : > { %v670_v23 = vadd.f32 %v605_v6, %v468_v10  ;;  %935 = vst [vmem:[%s1531_s23 + $0x70] sm:$0xff] %v870_v17  ;;  %v871_v30 = vadd.f32 %v806_v59, %v669_v18  ;;  %v607_v31 = vmul.f32 %v1481_v5, %v536_v14  ;;  %v809_v32 = vmul.f32 %v1486_v9, %v738_v15  ;;  %v742_v59 = vld [vmem:[%s1468_s29 + $0x2d8] sm:$0xff]  ;;  %v542_v18 = vld [vmem:[%s1468_s29 + $0x310] sm:$0xff] }
  0x7b   : > { %v269_v33 = vmul.f32 %v1474_v0, %v198_v16  ;;  %v671_v36 = vadd.f32 %v606_v19, %v469_v24  ;;  %v470_v37 = vadd.f32 %v405_v26, %v268_v25  ;;  %v406_v38 = vmul.f32 %v1477_v2, %v335_v21  ;;  %v204_v24 = vld [vmem:[%s1468_s29 + $0x320] sm:$0xff]  ;;  %v341_v25 = vld [vmem:[%s1468_s29 + $0x328] sm:$0xff] }
  0x7c   : > { %v872_v35 = vadd.f32 %v807_v11, %v670_v23  ;;  %936 = vst [vmem:[%s1531_s23 + $0x78] sm:$0xff] %v871_v30  ;;  %v608_v42 = vmul.f32 %v1481_v5, %v537_v22  ;;  %v810_v43 = vmul.f32 %v1486_v9, %v739_v27  ;;  %v270_v44 = vmul.f32 %v1474_v0, %v199_v28  ;;  %v743_v11 = vld [vmem:[%s1468_s29 + $0x2f8] sm:$0xff]  ;;  %v543_v30 = vld [vmem:[%s1468_s29 + $0x330] sm:$0xff] }
  0x7d   : > { %v407_v45 = vmul.f32 %v1477_v2, %v336_v29  ;;  %v873_v48 = vadd.f32 %v808_v20, %v671_v36  ;;  %v672_v49 = vadd.f32 %v607_v31, %v470_v37  ;;  %v471_v50 = vadd.f32 %v406_v38, %v269_v33  ;;  %v744_v23 = vld [vmem:[%s1468_s29 + $0x318] sm:$0xff]  ;;  %v205_v36 = vld [vmem:[%s1468_s29 + $0x340] sm:$0xff]  ;;  %v342_v37 = vld [vmem:[%s1468_s29 + $0x348] sm:$0xff] }
  0x7e   : > { %937 = vst [vmem:[%s1531_s23 + $0x80] sm:$0xff] %v872_v35  ;;  %v609_v51 = vmul.f32 %v1481_v5, %v538_v34  ;;  %v811_v55 = vmul.f32 %v1486_v9, %v740_v39  ;;  %v271_v56 = vmul.f32 %v1474_v0, %v200_v40  ;;  %v408_v57 = vmul.f32 %v1477_v2, %v337_v41  ;;  %v745_v31 = vld [vmem:[%s1468_s29 + $0x338] sm:$0xff] }
  0x7f   : > { %v472_v54 = vadd.f32 %v407_v45, %v270_v44  ;;  %938 = vst [vmem:[%s1531_s23 + $0x88] sm:$0xff] %v873_v48  ;;  %v874_v61 = vadd.f32 %v809_v32, %v672_v49  ;;  %v673_v62 = vadd.f32 %v608_v42, %v471_v50  ;;  %v610_v63 = vmul.f32 %v1481_v5, %v539_v46  ;;  %v544_v42 = vld [vmem:[%s1468_s29 + $0x350] sm:$0xff]  ;;  %v206_v44 = vld [vmem:[%s1468_s29 + $0x360] sm:$0xff]  ;;  %v343_v49 = vld [vmem:[%s1468_s29 + $0x368] sm:$0xff] }
  0x80   : > { %v812_v1 = vmul.f32 %v1486_v9, %v741_v47  ;;  %v473_v7 = vadd.f32 %v408_v57, %v271_v56  ;;  %v272_v8 = vmul.f32 %v1474_v0, %v201_v52  ;;  %v409_v10 = vmul.f32 %v1477_v2, %v338_v53  ;;  %v545_v50 = vld [vmem:[%s1468_s29 + $0x370] sm:$0xff]  ;;  %v207_v56 = vld [vmem:[%s1468_s29 + $0x380] sm:$0xff]  ;;  %v344_v57 = vld [vmem:[%s1468_s29 + $0x388] sm:$0xff] }
  0x81   : > { %v674_v6 = vadd.f32 %v609_v51, %v472_v54  ;;  %939 = vst [vmem:[%s1531_s23 + $0x90] sm:$0xff] %v874_v61  ;;  %v875_v14 = vadd.f32 %v810_v43, %v673_v62  ;;  %v611_v15 = vmul.f32 %v1481_v5, %v540_v58  ;;  %v813_v16 = vmul.f32 %v1486_v9, %v742_v59  ;;  %v746_v43 = vld [vmem:[%s1468_s29 + $0x358] sm:$0xff]  ;;  %v546_v62 = vld [vmem:[%s1468_s29 + $0x390] sm:$0xff] }
  0x82   : > { %v273_v17 = vmul.f32 %v1474_v0, %v202_v60  ;;  %v675_v20 = vadd.f32 %v610_v63, %v473_v7  ;;  %v474_v21 = vadd.f32 %v409_v10, %v272_v8  ;;  %v410_v22 = vmul.f32 %v1477_v2, %v339_v3  ;;  %v208_v7 = vld [vmem:[%s1468_s29 + $0x3a0] sm:$0xff]  ;;  %v345_v8 = vld [vmem:[%s1468_s29 + $0x3a8] sm:$0xff] }
  0x83   : > { %v876_v19 = vadd.f32 %v811_v55, %v674_v6  ;;  %940 = vst [vmem:[%s1531_s23 + $0x98] sm:$0xff] %v875_v14  ;;  %v612_v26 = vmul.f32 %v1481_v5, %v541_v4  ;;  %v814_v27 = vmul.f32 %v1486_v9, %v743_v11  ;;  %v274_v28 = vmul.f32 %v1474_v0, %v203_v12  ;;  %v747_v55 = vld [vmem:[%s1468_s29 + $0x378] sm:$0xff]  ;;  %v547_v14 = vld [vmem:[%s1468_s29 + $0x3b0] sm:$0xff] }
  0x84   : > { %v411_v29 = vmul.f32 %v1477_v2, %v340_v13  ;;  %v877_v32 = vadd.f32 %v812_v1, %v675_v20  ;;  %v676_v33 = vadd.f32 %v611_v15, %v474_v21  ;;  %v475_v34 = vadd.f32 %v410_v22, %v273_v17  ;;  %v748_v6 = vld [vmem:[%s1468_s29 + $0x398] sm:$0xff]  ;;  %v209_v20 = vld [vmem:[%s1468_s29 + $0x3c0] sm:$0xff]  ;;  %v346_v21 = vld [vmem:[%s1468_s29 + $0x3c8] sm:$0xff] }
  0x85   : > { %941 = vst [vmem:[%s1531_s23 + $0xa0] sm:$0xff] %v876_v19  ;;  %v613_v35 = vmul.f32 %v1481_v5, %v542_v18  ;;  %v815_v39 = vmul.f32 %v1486_v9, %v744_v23  ;;  %v275_v40 = vmul.f32 %v1474_v0, %v204_v24  ;;  %v412_v41 = vmul.f32 %v1477_v2, %v341_v25  ;;  %v749_v15 = vld [vmem:[%s1468_s29 + $0x3b8] sm:$0xff] }
  0x86   : > { %v476_v38 = vadd.f32 %v411_v29, %v274_v28  ;;  %942 = vst [vmem:[%s1531_s23 + $0xa8] sm:$0xff] %v877_v32  ;;  %v878_v45 = vadd.f32 %v813_v16, %v676_v33  ;;  %v677_v46 = vadd.f32 %v612_v26, %v475_v34  ;;  %v614_v47 = vmul.f32 %v1481_v5, %v543_v30  ;;  %v548_v26 = vld [vmem:[%s1468_s29 + $0x3d0] sm:$0xff]  ;;  %v210_v28 = vld [vmem:[%s1468_s29 + $0x3e0] sm:$0xff]  ;;  %v347_v33 = vld [vmem:[%s1468_s29 + $0x3e8] sm:$0xff] }
  0x87   : > { %v816_v48 = vmul.f32 %v1486_v9, %v745_v31  ;;  %v477_v52 = vadd.f32 %v412_v41, %v275_v40  ;;  %v276_v53 = vmul.f32 %v1474_v0, %v205_v36  ;;  %v413_v54 = vmul.f32 %v1477_v2, %v342_v37  ;;  %v549_v34 = vld [vmem:[%s1468_s29 + $0x3f0] sm:$0xff]  ;;  %v211_v40 = vld [vmem:[%s1468_s29 + $0x400] sm:$0xff]  ;;  %v348_v41 = vld [vmem:[%s1468_s29 + $0x408] sm:$0xff] }
  0x88   : > { %v678_v51 = vadd.f32 %v613_v35, %v476_v38  ;;  %943 = vst [vmem:[%s1531_s23 + $0xb0] sm:$0xff] %v878_v45  ;;  %v879_v58 = vadd.f32 %v814_v27, %v677_v46  ;;  %v615_v59 = vmul.f32 %v1481_v5, %v544_v42  ;;  %v817_v60 = vmul.f32 %v1486_v9, %v746_v43  ;;  %v750_v27 = vld [vmem:[%s1468_s29 + $0x3d8] sm:$0xff]  ;;  %v550_v46 = vld [vmem:[%s1468_s29 + $0x410] sm:$0xff] }
  0x89   : > { %v277_v61 = vmul.f32 %v1474_v0, %v206_v44  ;;  %v679_v1 = vadd.f32 %v614_v47, %v477_v52  ;;  %v478_v3 = vadd.f32 %v413_v54, %v276_v53  ;;  %v414_v4 = vmul.f32 %v1477_v2, %v343_v49  ;;  %v212_v52 = vld [vmem:[%s1468_s29 + $0x420] sm:$0xff]  ;;  %v349_v53 = vld [vmem:[%s1468_s29 + $0x428] sm:$0xff] }
  0x8a   : > { %v880_v63 = vadd.f32 %v815_v39, %v678_v51  ;;  %944 = vst [vmem:[%s1531_s23 + $0xb8] sm:$0xff] %v879_v58  ;;  %v616_v10 = vmul.f32 %v1481_v5, %v545_v50  ;;  %v818_v11 = vmul.f32 %v1486_v9, %v747_v55  ;;  %v278_v12 = vmul.f32 %v1474_v0, %v207_v56  ;;  %v751_v39 = vld [vmem:[%s1468_s29 + $0x3f8] sm:$0xff]  ;;  %v551_v58 = vld [vmem:[%s1468_s29 + $0x430] sm:$0xff] }
  0x8b   : > { %v415_v13 = vmul.f32 %v1477_v2, %v344_v57  ;;  %v881_v16 = vadd.f32 %v816_v48, %v679_v1  ;;  %v680_v17 = vadd.f32 %v615_v59, %v478_v3  ;;  %v479_v18 = vadd.f32 %v414_v4, %v277_v61  ;;  %v752_v51 = vld [vmem:[%s1468_s29 + $0x418] sm:$0xff]  ;;  %v213_v1 = vld [vmem:[%s1468_s29 + $0x440] sm:$0xff]  ;;  %v350_v3 = vld [vmem:[%s1468_s29 + $0x448] sm:$0xff] }
  0x8c   : > { %945 = vst [vmem:[%s1531_s23 + $0xc0] sm:$0xff] %v880_v63  ;;  %v617_v19 = vmul.f32 %v1481_v5, %v546_v62  ;;  %v819_v23 = vmul.f32 %v1486_v9, %v748_v6  ;;  %v279_v24 = vmul.f32 %v1474_v0, %v208_v7  ;;  %v416_v25 = vmul.f32 %v1477_v2, %v345_v8  ;;  %v753_v59 = vld [vmem:[%s1468_s29 + $0x438] sm:$0xff] }
  0x8d   : > { %v480_v22 = vadd.f32 %v415_v13, %v278_v12  ;;  %946 = vst [vmem:[%s1531_s23 + $0xc8] sm:$0xff] %v881_v16  ;;  %v882_v29 = vadd.f32 %v817_v60, %v680_v17  ;;  %v681_v30 = vadd.f32 %v616_v10, %v479_v18  ;;  %v618_v31 = vmul.f32 %v1481_v5, %v547_v14  ;;  %v552_v10 = vld [vmem:[%s1468_s29 + $0x450] sm:$0xff]  ;;  %v214_v12 = vld [vmem:[%s1468_s29 + $0x460] sm:$0xff]  ;;  %v351_v17 = vld [vmem:[%s1468_s29 + $0x468] sm:$0xff] }
  0x8e   : > { %v820_v32 = vmul.f32 %v1486_v9, %v749_v15  ;;  %v481_v36 = vadd.f32 %v416_v25, %v279_v24  ;;  %v280_v37 = vmul.f32 %v1474_v0, %v209_v20  ;;  %v417_v38 = vmul.f32 %v1477_v2, %v346_v21  ;;  %v553_v18 = vld [vmem:[%s1468_s29 + $0x470] sm:$0xff]  ;;  %v215_v24 = vld [vmem:[%s1468_s29 + $0x480] sm:$0xff]  ;;  %v352_v25 = vld [vmem:[%s1468_s29 + $0x488] sm:$0xff] }
  0x8f   : > { %v682_v35 = vadd.f32 %v617_v19, %v480_v22  ;;  %947 = vst [vmem:[%s1531_s23 + $0xd0] sm:$0xff] %v882_v29  ;;  %v883_v42 = vadd.f32 %v818_v11, %v681_v30  ;;  %v619_v43 = vmul.f32 %v1481_v5, %v548_v26  ;;  %v821_v44 = vmul.f32 %v1486_v9, %v750_v27  ;;  %v754_v11 = vld [vmem:[%s1468_s29 + $0x458] sm:$0xff]  ;;  %v554_v30 = vld [vmem:[%s1468_s29 + $0x490] sm:$0xff] }
  0x90   : > { %v281_v45 = vmul.f32 %v1474_v0, %v210_v28  ;;  %v683_v48 = vadd.f32 %v618_v31, %v481_v36  ;;  %v482_v49 = vadd.f32 %v417_v38, %v280_v37  ;;  %v418_v50 = vmul.f32 %v1477_v2, %v347_v33  ;;  %v216_v36 = vld [vmem:[%s1468_s29 + $0x4a0] sm:$0xff]  ;;  %v353_v37 = vld [vmem:[%s1468_s29 + $0x4a8] sm:$0xff] }
  0x91   : > { %v884_v47 = vadd.f32 %v819_v23, %v682_v35  ;;  %948 = vst [vmem:[%s1531_s23 + $0xd8] sm:$0xff] %v883_v42  ;;  %v620_v54 = vmul.f32 %v1481_v5, %v549_v34  ;;  %v822_v55 = vmul.f32 %v1486_v9, %v751_v39  ;;  %v282_v56 = vmul.f32 %v1474_v0, %v211_v40  ;;  %v755_v23 = vld [vmem:[%s1468_s29 + $0x478] sm:$0xff]  ;;  %v555_v42 = vld [vmem:[%s1468_s29 + $0x4b0] sm:$0xff] }
  0x92   : > { %v419_v57 = vmul.f32 %v1477_v2, %v348_v41  ;;  %v885_v60 = vadd.f32 %v820_v32, %v683_v48  ;;  %v684_v61 = vadd.f32 %v619_v43, %v482_v49  ;;  %v483_v62 = vadd.f32 %v418_v50, %v281_v45  ;;  %v756_v35 = vld [vmem:[%s1468_s29 + $0x498] sm:$0xff]  ;;  %v217_v48 = vld [vmem:[%s1468_s29 + $0x4c0] sm:$0xff]  ;;  %v354_v49 = vld [vmem:[%s1468_s29 + $0x4c8] sm:$0xff] }
  0x93   : > { %949 = vst [vmem:[%s1531_s23 + $0xe0] sm:$0xff] %v884_v47  ;;  %v621_v63 = vmul.f32 %v1481_v5, %v550_v46  ;;  %v823_v6 = vmul.f32 %v1486_v9, %v752_v51  ;;  %v283_v7 = vmul.f32 %v1474_v0, %v212_v52  ;;  %v420_v8 = vmul.f32 %v1477_v2, %v349_v53  ;;  %v757_v43 = vld [vmem:[%s1468_s29 + $0x4b8] sm:$0xff] }
  0x94   : > { %v484_v4 = vadd.f32 %v419_v57, %v282_v56  ;;  %950 = vst [vmem:[%s1531_s23 + $0xe8] sm:$0xff] %v885_v60  ;;  %v886_v13 = vadd.f32 %v821_v44, %v684_v61  ;;  %v685_v14 = vadd.f32 %v620_v54, %v483_v62  ;;  %v622_v15 = vmul.f32 %v1481_v5, %v551_v58  ;;  %v556_v54 = vld [vmem:[%s1468_s29 + $0x4d0] sm:$0xff]  ;;  %v218_v56 = vld [vmem:[%s1468_s29 + $0x4e0] sm:$0xff]  ;;  %v355_v61 = vld [vmem:[%s1468_s29 + $0x4e8] sm:$0xff] }
  0x95   : > { %v824_v16 = vmul.f32 %v1486_v9, %v753_v59  ;;  %v485_v20 = vadd.f32 %v420_v8, %v283_v7  ;;  %v284_v21 = vmul.f32 %v1474_v0, %v213_v1  ;;  %v421_v22 = vmul.f32 %v1477_v2, %v350_v3  ;;  %v557_v62 = vld [vmem:[%s1468_s29 + $0x4f0] sm:$0xff]  ;;  %v219_v7 = vld [vmem:[%s1468_s29 + $0x500] sm:$0xff]  ;;  %v356_v8 = vld [vmem:[%s1468_s29 + $0x508] sm:$0xff] }
  0x96   : > { %v686_v19 = vadd.f32 %v621_v63, %v484_v4  ;;  %951 = vst [vmem:[%s1531_s23 + $0xf0] sm:$0xff] %v886_v13  ;;  %v887_v26 = vadd.f32 %v822_v55, %v685_v14  ;;  %v623_v27 = vmul.f32 %v1481_v5, %v552_v10  ;;  %v825_v28 = vmul.f32 %v1486_v9, %v754_v11  ;;  %v758_v55 = vld [vmem:[%s1468_s29 + $0x4d8] sm:$0xff]  ;;  %v558_v14 = vld [vmem:[%s1468_s29 + $0x510] sm:$0xff] }
  0x97   : > { %v285_v29 = vmul.f32 %v1474_v0, %v214_v12  ;;  %v687_v32 = vadd.f32 %v622_v15, %v485_v20  ;;  %v486_v33 = vadd.f32 %v421_v22, %v284_v21  ;;  %v422_v34 = vmul.f32 %v1477_v2, %v351_v17  ;;  %v220_v20 = vld [vmem:[%s1468_s29 + $0x520] sm:$0xff]  ;;  %v357_v21 = vld [vmem:[%s1468_s29 + $0x528] sm:$0xff] }
  0x98   : > { %v888_v31 = vadd.f32 %v823_v6, %v686_v19  ;;  %952 = vst [vmem:[%s1531_s23 + $0xf8] sm:$0xff] %v887_v26  ;;  %v624_v38 = vmul.f32 %v1481_v5, %v553_v18  ;;  %v826_v39 = vmul.f32 %v1486_v9, %v755_v23  ;;  %v286_v40 = vmul.f32 %v1474_v0, %v215_v24  ;;  %v759_v6 = vld [vmem:[%s1468_s29 + $0x4f8] sm:$0xff]  ;;  %v559_v26 = vld [vmem:[%s1468_s29 + $0x530] sm:$0xff] }
  0x99   : > { %v423_v41 = vmul.f32 %v1477_v2, %v352_v25  ;;  %v889_v44 = vadd.f32 %v824_v16, %v687_v32  ;;  %v688_v45 = vadd.f32 %v623_v27, %v486_v33  ;;  %v487_v46 = vadd.f32 %v422_v34, %v285_v29  ;;  %v760_v19 = vld [vmem:[%s1468_s29 + $0x518] sm:$0xff]  ;;  %v221_v32 = vld [vmem:[%s1468_s29 + $0x540] sm:$0xff]  ;;  %v358_v33 = vld [vmem:[%s1468_s29 + $0x548] sm:$0xff] }
  0x9a   : > { %953 = vst [vmem:[%s1531_s23 + $0x100] sm:$0xff] %v888_v31  ;;  %v625_v47 = vmul.f32 %v1481_v5, %v554_v30  ;;  %v827_v51 = vmul.f32 %v1486_v9, %v756_v35  ;;  %v287_v52 = vmul.f32 %v1474_v0, %v216_v36  ;;  %v424_v53 = vmul.f32 %v1477_v2, %v353_v37  ;;  %v761_v27 = vld [vmem:[%s1468_s29 + $0x538] sm:$0xff] }
  0x9b   : > { %v488_v50 = vadd.f32 %v423_v41, %v286_v40  ;;  %954 = vst [vmem:[%s1531_s23 + $0x108] sm:$0xff] %v889_v44  ;;  %v890_v57 = vadd.f32 %v825_v28, %v688_v45  ;;  %v689_v58 = vadd.f32 %v624_v38, %v487_v46  ;;  %v626_v59 = vmul.f32 %v1481_v5, %v555_v42  ;;  %v560_v38 = vld [vmem:[%s1468_s29 + $0x550] sm:$0xff]  ;;  %v222_v40 = vld [vmem:[%s1468_s29 + $0x560] sm:$0xff]  ;;  %v359_v45 = vld [vmem:[%s1468_s29 + $0x568] sm:$0xff] }
  0x9c   : > { %v828_v60 = vmul.f32 %v1486_v9, %v757_v43  ;;  %v489_v1 = vadd.f32 %v424_v53, %v287_v52  ;;  %v288_v3 = vmul.f32 %v1474_v0, %v217_v48  ;;  %v425_v4 = vmul.f32 %v1477_v2, %v354_v49  ;;  %v561_v46 = vld [vmem:[%s1468_s29 + $0x570] sm:$0xff]  ;;  %v223_v52 = vld [vmem:[%s1468_s29 + $0x580] sm:$0xff]  ;;  %v360_v53 = vld [vmem:[%s1468_s29 + $0x588] sm:$0xff] }
  0x9d   : > { %v690_v63 = vadd.f32 %v625_v47, %v488_v50  ;;  %955 = vst [vmem:[%s1531_s23 + $0x110] sm:$0xff] %v890_v57  ;;  %v891_v10 = vadd.f32 %v826_v39, %v689_v58  ;;  %v627_v11 = vmul.f32 %v1481_v5, %v556_v54  ;;  %v829_v12 = vmul.f32 %v1486_v9, %v758_v55  ;;  %v762_v39 = vld [vmem:[%s1468_s29 + $0x558] sm:$0xff] }
  0x9e   : > { %v289_v13 = vmul.f32 %v1474_v0, %v218_v56  ;;  %v691_v16 = vadd.f32 %v626_v59, %v489_v1  ;;  %v490_v17 = vadd.f32 %v425_v4, %v288_v3  ;;  %v426_v18 = vmul.f32 %v1477_v2, %v355_v61  ;;  %v1876_v57 = vld [vmem:[#allocation2] ss:$0 sm:$0xff]  ;;  %v1880_v61 = vld [vmem:[#allocation2 + $0x1] ss:$0 sm:$0xff]  ;;  %v224_v1 = vld [vmem:[%s1468_s29 + $0x5a0] sm:$0xff] }
  0x9f   : > { %v892_v15 = vadd.f32 %v827_v51, %v690_v63  ;;  %956 = vst [vmem:[%s1531_s23 + $0x118] sm:$0xff] %v891_v10  ;;  %v628_v22 = vmul.f32 %v1481_v5, %v557_v62  ;;  %v830_v23 = vmul.f32 %v1486_v9, %v759_v6  ;;  %v290_v24 = vmul.f32 %v1474_v0, %v219_v7  ;;  %v763_v51 = vld [vmem:[%s1468_s29 + $0x578] sm:$0xff]  ;;  %v563_v10 = vld [vmem:[%s1468_s29 + $0x5b0] sm:$0xff] }
  0xa0   : > { %v427_v25 = vmul.f32 %v1477_v2, %v356_v8  ;;  %v893_v28 = vadd.f32 %v828_v60, %v691_v16  ;;  %v692_v29 = vadd.f32 %v627_v11, %v490_v17  ;;  %v491_v30 = vadd.f32 %v426_v18, %v289_v13  ;;  %v764_v63 = vld [vmem:[%s1468_s29 + $0x598] sm:$0xff]  ;;  %v225_v16 = vld [vmem:[%s1468_s29 + $0x5c0] sm:$0xff]  ;;  %v362_v17 = vld [vmem:[%s1468_s29 + $0x5c8] sm:$0xff] }
  0xa1   : > { %957 = vst [vmem:[%s1531_s23 + $0x120] sm:$0xff] %v892_v15  ;;  %v629_v31 = vmul.f32 %v1481_v5, %v558_v14  ;;  %v831_v35 = vmul.f32 %v1486_v9, %v760_v19  ;;  %v291_v36 = vmul.f32 %v1474_v0, %v220_v20  ;;  %v428_v37 = vmul.f32 %v1477_v2, %v357_v21  ;;  %v1890_v4 = vld [vmem:[#allocation2 + $0x3] ss:$0 sm:$0xff] }
  0xa2   : > { %v492_v34 = vadd.f32 %v427_v25, %v290_v24  ;;  %958 = vst [vmem:[%s1531_s23 + $0x128] sm:$0xff] %v893_v28  ;;  %v894_v41 = vadd.f32 %v829_v12, %v692_v29  ;;  %v693_v42 = vadd.f32 %v628_v22, %v491_v30  ;;  %v630_v43 = vmul.f32 %v1481_v5, %v559_v26  ;;  %v765_v11 = vld [vmem:[%s1468_s29 + $0x5b8] sm:$0xff]  ;;  %v564_v22 = vld [vmem:[%s1468_s29 + $0x5d0] sm:$0xff]  ;;  %v226_v24 = vld [vmem:[%s1468_s29 + $0x5e0] sm:$0xff] }
  0xa3   : > { %v832_v44 = vmul.f32 %v1486_v9, %v761_v27  ;;  %v493_v48 = vadd.f32 %v428_v37, %v291_v36  ;;  %v292_v49 = vmul.f32 %v1474_v0, %v221_v32  ;;  %v429_v50 = vmul.f32 %v1477_v2, %v358_v33  ;;  %v562_v0 = vld [vmem:[%s1468_s29 + $0x590] sm:$0xff]  ;;  %v363_v29 = vld [vmem:[%s1468_s29 + $0x5e8] sm:$0xff]  ;;  %v227_v36 = vld [vmem:[%s1468_s29 + $0x600] sm:$0xff] }
  0xa4   : > { %v694_v47 = vadd.f32 %v629_v31, %v492_v34  ;;  %959 = vst [vmem:[%s1531_s23 + $0x130] sm:$0xff] %v894_v41  ;;  %v895_v54 = vadd.f32 %v830_v23, %v693_v42  ;;  %v631_v55 = vmul.f32 %v1481_v5, %v560_v38  ;;  %v833_v56 = vmul.f32 %v1486_v9, %v762_v39  ;;  %v361_v5 = vld [vmem:[%s1468_s29 + $0x5a8] sm:$0xff]  ;;  %v1887_v9 = vld [vmem:[#allocation2 + $0x2] ss:$0 sm:$0xff]  ;;  %v565_v30 = vld [vmem:[%s1468_s29 + $0x5f0] sm:$0xff] }
  0xa5   : > { %v293_v58 = vmul.f32 %v1876_v57, %v222_v40  ;;  %v695_v59 = vadd.f32 %v630_v43, %v493_v48  ;;  %v494_v60 = vadd.f32 %v429_v50, %v292_v49  ;;  %v430_v62 = vmul.f32 %v1880_v61, %v359_v45  ;;  %v766_v23 = vld [vmem:[%s1468_s29 + $0x5d8] sm:$0xff]  ;;  %v364_v37 = vld [vmem:[%s1468_s29 + $0x608] sm:$0xff]  ;;  %v566_v42 = vld [vmem:[%s1468_s29 + $0x610] sm:$0xff] }
  0xa6   : > { %v896_v2 = vadd.f32 %v831_v35, %v694_v47  ;;  %960 = vst [vmem:[%s1531_s23 + $0x138] sm:$0xff] %v895_v54  ;;  %v632_v3 = vmul.f32 %v1887_v9, %v561_v46  ;;  %v834_v6 = vmul.f32 %v1890_v4, %v763_v51  ;;  %v294_v7 = vmul.f32 %v1876_v57, %v223_v52  ;;  %v767_v35 = vld [vmem:[%s1468_s29 + $0x5f8] sm:$0xff]  ;;  %v228_v48 = vld [vmem:[%s1468_s29 + $0x620] sm:$0xff]  ;;  %v365_v49 = vld [vmem:[%s1468_s29 + $0x628] sm:$0xff] }
  0xa7   : > { %v431_v8 = vmul.f32 %v1880_v61, %v360_v53  ;;  %v897_v12 = vadd.f32 %v832_v44, %v695_v59  ;;  %v696_v13 = vadd.f32 %v631_v55, %v494_v60  ;;  %v495_v14 = vadd.f32 %v430_v62, %v293_v58  ;;  %v768_v47 = vld [vmem:[%s1468_s29 + $0x618] sm:$0xff]  ;;  %v567_v54 = vld [vmem:[%s1468_s29 + $0x630] sm:$0xff]  ;;  %v229_v59 = vld [vmem:[%s1468_s29 + $0x640] sm:$0xff] }
  0xa8   : > { %961 = vst [vmem:[%s1531_s23 + $0x140] sm:$0xff] %v896_v2  ;;  %v633_v15 = vmul.f32 %v1887_v9, %v562_v0  ;;  %v835_v19 = vmul.f32 %v1890_v4, %v764_v63  ;;  %v295_v20 = vmul.f32 %v1876_v57, %v224_v1  ;;  %v432_v21 = vmul.f32 %v1880_v61, %v361_v5  ;;  %v769_v55 = vld [vmem:[%s1468_s29 + $0x638] sm:$0xff]  ;;  %v366_v60 = vld [vmem:[%s1468_s29 + $0x648] sm:$0xff] }
  0xa9   : > { %v496_v18 = vadd.f32 %v431_v8, %v294_v7  ;;  %962 = vst [vmem:[%s1531_s23 + $0x148] sm:$0xff] %v897_v12  ;;  %v898_v25 = vadd.f32 %v833_v56, %v696_v13  ;;  %v697_v26 = vadd.f32 %v632_v3, %v495_v14  ;;  %v634_v27 = vmul.f32 %v1887_v9, %v563_v10  ;;  %v568_v3 = vld [vmem:[%s1468_s29 + $0x650] sm:$0xff]  ;;  %v230_v7 = vld [vmem:[%s1468_s29 + $0x660] sm:$0xff]  ;;  %v367_v13 = vld [vmem:[%s1468_s29 + $0x668] sm:$0xff] }
  0xaa   : > { %v836_v28 = vmul.f32 %v1890_v4, %v765_v11  ;;  %v497_v32 = vadd.f32 %v432_v21, %v295_v20  ;;  %v296_v33 = vmul.f32 %v1876_v57, %v225_v16  ;;  %v433_v34 = vmul.f32 %v1880_v61, %v362_v17  ;;  %v569_v14 = vld [vmem:[%s1468_s29 + $0x670] sm:$0xff]  ;;  %v231_v20 = vld [vmem:[%s1468_s29 + $0x680] sm:$0xff]  ;;  %v368_v21 = vld [vmem:[%s1468_s29 + $0x688] sm:$0xff] }
  0xab   : > { %v698_v31 = vadd.f32 %v633_v15, %v496_v18  ;;  %963 = vst [vmem:[%s1531_s23 + $0x150] sm:$0xff] %v898_v25  ;;  %v899_v38 = vadd.f32 %v834_v6, %v697_v26  ;;  %v635_v39 = vmul.f32 %v1887_v9, %v564_v22  ;;  %v837_v40 = vmul.f32 %v1890_v4, %v766_v23  ;;  %v770_v6 = vld [vmem:[%s1468_s29 + $0x658] sm:$0xff]  ;;  %v570_v26 = vld [vmem:[%s1468_s29 + $0x690] sm:$0xff] }
  0xac   : > { %v297_v41 = vmul.f32 %v1876_v57, %v226_v24  ;;  %v699_v44 = vadd.f32 %v634_v27, %v497_v32  ;;  %v498_v45 = vadd.f32 %v433_v34, %v296_v33  ;;  %v434_v46 = vmul.f32 %v1880_v61, %v363_v29  ;;  %v232_v32 = vld [vmem:[%s1468_s29 + $0x6a0] sm:$0xff]  ;;  %v369_v33 = vld [vmem:[%s1468_s29 + $0x6a8] sm:$0xff] }
  0xad   : > { %v900_v43 = vadd.f32 %v835_v19, %v698_v31  ;;  %964 = vst [vmem:[%s1531_s23 + $0x158] sm:$0xff] %v899_v38  ;;  %v636_v50 = vmul.f32 %v1887_v9, %v565_v30  ;;  %v838_v51 = vmul.f32 %v1890_v4, %v767_v35  ;;  %v298_v52 = vmul.f32 %v1876_v57, %v227_v36  ;;  %v771_v19 = vld [vmem:[%s1468_s29 + $0x678] sm:$0xff]  ;;  %v571_v38 = vld [vmem:[%s1468_s29 + $0x6b0] sm:$0xff] }
  0xae   : > { %v435_v53 = vmul.f32 %v1880_v61, %v364_v37  ;;  %v901_v56 = vadd.f32 %v836_v28, %v699_v44  ;;  %v700_v58 = vadd.f32 %v635_v39, %v498_v45  ;;  %v499_v0 = vadd.f32 %v434_v46, %v297_v41  ;;  %v772_v31 = vld [vmem:[%s1468_s29 + $0x698] sm:$0xff]  ;;  %v233_v44 = vld [vmem:[%s1468_s29 + $0x6c0] sm:$0xff]  ;;  %v370_v45 = vld [vmem:[%s1468_s29 + $0x6c8] sm:$0xff] }
  0xaf   : > { %965 = vst [vmem:[%s1531_s23 + $0x160] sm:$0xff] %v900_v43  ;;  %v637_v2 = vmul.f32 %v1887_v9, %v566_v42  ;;  %v839_v63 = vmul.f32 %v1890_v4, %v768_v47  ;;  %v299_v1 = vmul.f32 %v1876_v57, %v228_v48  ;;  %v436_v5 = vmul.f32 %v1880_v61, %v365_v49  ;;  %v773_v39 = vld [vmem:[%s1468_s29 + $0x6b8] sm:$0xff] }
  0xb0   : > { %v500_v62 = vadd.f32 %v435_v53, %v298_v52  ;;  %966 = vst [vmem:[%s1531_s23 + $0x168] sm:$0xff] %v901_v56  ;;  %v902_v8 = vadd.f32 %v837_v40, %v700_v58  ;;  %v701_v10 = vadd.f32 %v636_v50, %v499_v0  ;;  %v638_v11 = vmul.f32 %v1887_v9, %v567_v54  ;;  %v572_v50 = vld [vmem:[%s1468_s29 + $0x6d0] sm:$0xff]  ;;  %v234_v52 = vld [vmem:[%s1468_s29 + $0x6e0] sm:$0xff]  ;;  %v371_v58 = vld [vmem:[%s1468_s29 + $0x6e8] sm:$0xff] }
  0xb1   : > { %v840_v12 = vmul.f32 %v1890_v4, %v769_v55  ;;  %v501_v16 = vadd.f32 %v436_v5, %v299_v1  ;;  %v300_v17 = vmul.f32 %v1876_v57, %v229_v59  ;;  %v437_v18 = vmul.f32 %v1880_v61, %v366_v60  ;;  %v573_v0 = vld [vmem:[%s1468_s29 + $0x6f0] sm:$0xff]  ;;  %v235_v1 = vld [vmem:[%s1468_s29 + $0x700] sm:$0xff]  ;;  %v372_v5 = vld [vmem:[%s1468_s29 + $0x708] sm:$0xff] }
  0xb2   : > { %v702_v15 = vadd.f32 %v637_v2, %v500_v62  ;;  %967 = vst [vmem:[%s1531_s23 + $0x170] sm:$0xff] %v902_v8  ;;  %v903_v22 = vadd.f32 %v838_v51, %v701_v10  ;;  %v639_v23 = vmul.f32 %v1887_v9, %v568_v3  ;;  %v841_v24 = vmul.f32 %v1890_v4, %v770_v6  ;;  %v774_v51 = vld [vmem:[%s1468_s29 + $0x6d8] sm:$0xff]  ;;  %v574_v10 = vld [vmem:[%s1468_s29 + $0x710] sm:$0xff] }
  0xb3   : > { %v301_v25 = vmul.f32 %v1876_v57, %v230_v7  ;;  %v703_v28 = vadd.f32 %v638_v11, %v501_v16  ;;  %v502_v29 = vadd.f32 %v437_v18, %v300_v17  ;;  %v438_v30 = vmul.f32 %v1880_v61, %v367_v13  ;;  %v236_v16 = vld [vmem:[%s1468_s29 + $0x720] sm:$0xff]  ;;  %v373_v17 = vld [vmem:[%s1468_s29 + $0x728] sm:$0xff] }
  0xb4   : > { %v904_v27 = vadd.f32 %v839_v63, %v702_v15  ;;  %968 = vst [vmem:[%s1531_s23 + $0x178] sm:$0xff] %v903_v22  ;;  %v640_v34 = vmul.f32 %v1887_v9, %v569_v14  ;;  %v842_v35 = vmul.f32 %v1890_v4, %v771_v19  ;;  %v302_v36 = vmul.f32 %v1876_v57, %v231_v20  ;;  %v775_v63 = vld [vmem:[%s1468_s29 + $0x6f8] sm:$0xff]  ;;  %v575_v22 = vld [vmem:[%s1468_s29 + $0x730] sm:$0xff] }
  0xb5   : > { %v439_v37 = vmul.f32 %v1880_v61, %v368_v21  ;;  %v905_v40 = vadd.f32 %v840_v12, %v703_v28  ;;  %v704_v41 = vadd.f32 %v639_v23, %v502_v29  ;;  %v503_v42 = vadd.f32 %v438_v30, %v301_v25  ;;  %v776_v15 = vld [vmem:[%s1468_s29 + $0x718] sm:$0xff]  ;;  %v237_v28 = vld [vmem:[%s1468_s29 + $0x740] sm:$0xff]  ;;  %v374_v29 = vld [vmem:[%s1468_s29 + $0x748] sm:$0xff] }
  0xb6   : > { %969 = vst [vmem:[%s1531_s23 + $0x180] sm:$0xff] %v904_v27  ;;  %v641_v43 = vmul.f32 %v1887_v9, %v570_v26  ;;  %v843_v47 = vmul.f32 %v1890_v4, %v772_v31  ;;  %v303_v48 = vmul.f32 %v1876_v57, %v232_v32  ;;  %v440_v49 = vmul.f32 %v1880_v61, %v369_v33  ;;  %v777_v23 = vld [vmem:[%s1468_s29 + $0x738] sm:$0xff] }
  0xb7   : > { %v504_v46 = vadd.f32 %v439_v37, %v302_v36  ;;  %970 = vst [vmem:[%s1531_s23 + $0x188] sm:$0xff] %v905_v40  ;;  %v906_v53 = vadd.f32 %v841_v24, %v704_v41  ;;  %v705_v54 = vadd.f32 %v640_v34, %v503_v42  ;;  %v642_v55 = vmul.f32 %v1887_v9, %v571_v38  ;;  %v576_v34 = vld [vmem:[%s1468_s29 + $0x750] sm:$0xff]  ;;  %v238_v36 = vld [vmem:[%s1468_s29 + $0x760] sm:$0xff]  ;;  %v375_v41 = vld [vmem:[%s1468_s29 + $0x768] sm:$0xff] }
  0xb8   : > { %v844_v56 = vmul.f32 %v1890_v4, %v773_v39  ;;  %v505_v59 = vadd.f32 %v440_v49, %v303_v48  ;;  %v304_v60 = vmul.f32 %v1876_v57, %v233_v44  ;;  %v441_v62 = vmul.f32 %v1880_v61, %v370_v45  ;;  %v577_v42 = vld [vmem:[%s1468_s29 + $0x770] sm:$0xff]  ;;  %v239_v48 = vld [vmem:[%s1468_s29 + $0x780] sm:$0xff]  ;;  %v376_v49 = vld [vmem:[%s1468_s29 + $0x788] sm:$0xff] }
  0xb9   : > { %v706_v2 = vadd.f32 %v641_v43, %v504_v46  ;;  %971 = vst [vmem:[%s1531_s23 + $0x190] sm:$0xff] %v906_v53  ;;  %v907_v3 = vadd.f32 %v842_v35, %v705_v54  ;;  %v643_v6 = vmul.f32 %v1887_v9, %v572_v50  ;;  %v845_v7 = vmul.f32 %v1890_v4, %v774_v51  ;;  %v778_v35 = vld [vmem:[%s1468_s29 + $0x758] sm:$0xff]  ;;  %v578_v54 = vld [vmem:[%s1468_s29 + $0x790] sm:$0xff] }
  0xba   : > { %v305_v8 = vmul.f32 %v1876_v57, %v234_v52  ;;  %v707_v12 = vadd.f32 %v642_v55, %v505_v59  ;;  %v506_v13 = vadd.f32 %v441_v62, %v304_v60  ;;  %v442_v14 = vmul.f32 %v1880_v61, %v371_v58  ;;  %v240_v59 = vld [vmem:[%s1468_s29 + $0x7a0] sm:$0xff]  ;;  %v377_v60 = vld [vmem:[%s1468_s29 + $0x7a8] sm:$0xff] }
  0xbb   : > { %v908_v11 = vadd.f32 %v843_v47, %v706_v2  ;;  %972 = vst [vmem:[%s1531_s23 + $0x198] sm:$0xff] %v907_v3  ;;  %v644_v18 = vmul.f32 %v1887_v9, %v573_v0  ;;  %v846_v19 = vmul.f32 %v1890_v4, %v775_v63  ;;  %v306_v20 = vmul.f32 %v1876_v57, %v235_v1  ;;  %v779_v47 = vld [vmem:[%s1468_s29 + $0x778] sm:$0xff]  ;;  %v579_v3 = vld [vmem:[%s1468_s29 + $0x7b0] sm:$0xff] }
  0xbc   : > { %v443_v21 = vmul.f32 %v1880_v61, %v372_v5  ;;  %v909_v24 = vadd.f32 %v844_v56, %v707_v12  ;;  %v708_v25 = vadd.f32 %v643_v6, %v506_v13  ;;  %v507_v26 = vadd.f32 %v442_v14, %v305_v8  ;;  %v780_v2 = vld [vmem:[%s1468_s29 + $0x798] sm:$0xff]  ;;  %v241_v12 = vld [vmem:[%s1468_s29 + $0x7c0] sm:$0xff]  ;;  %v378_v13 = vld [vmem:[%s1468_s29 + $0x7c8] sm:$0xff] }
  0xbd   : > { %973 = vst [vmem:[%s1531_s23 + $0x1a0] sm:$0xff] %v908_v11  ;;  %v645_v27 = vmul.f32 %v1887_v9, %v574_v10  ;;  %v847_v31 = vmul.f32 %v1890_v4, %v776_v15  ;;  %v307_v32 = vmul.f32 %v1876_v57, %v236_v16  ;;  %v444_v33 = vmul.f32 %v1880_v61, %v373_v17  ;;  %v781_v6 = vld [vmem:[%s1468_s29 + $0x7b8] sm:$0xff] }
  0xbe   : > { %v508_v30 = vadd.f32 %v443_v21, %v306_v20  ;;  %974 = vst [vmem:[%s1531_s23 + $0x1a8] sm:$0xff] %v909_v24  ;;  %v910_v37 = vadd.f32 %v845_v7, %v708_v25  ;;  %v709_v38 = vadd.f32 %v644_v18, %v507_v26  ;;  %v646_v39 = vmul.f32 %v1887_v9, %v575_v22  ;;  %v580_v18 = vld [vmem:[%s1468_s29 + $0x7d0] sm:$0xff]  ;;  %v242_v20 = vld [vmem:[%s1468_s29 + $0x7e0] sm:$0xff]  ;;  %v379_v25 = vld [vmem:[%s1468_s29 + $0x7e8] sm:$0xff] }
  0xbf   : > { %v848_v40 = vmul.f32 %v1890_v4, %v777_v23  ;;  %v509_v44 = vadd.f32 %v444_v33, %v307_v32  ;;  %v308_v45 = vmul.f32 %v1876_v57, %v237_v28  ;;  %v445_v46 = vmul.f32 %v1880_v61, %v374_v29  ;;  %v581_v26 = vld [vmem:[%s1468_s29 + $0x7f0] sm:$0xff]  ;;  %v243_v32 = vld [vmem:[%s1468_s29 + $0x800] sm:$0xff]  ;;  %v380_v33 = vld [vmem:[%s1468_s29 + $0x808] sm:$0xff] }
  0xc0   : > { %v710_v43 = vadd.f32 %v645_v27, %v508_v30  ;;  %975 = vst [vmem:[%s1531_s23 + $0x1b0] sm:$0xff] %v910_v37  ;;  %v911_v50 = vadd.f32 %v846_v19, %v709_v38  ;;  %v647_v51 = vmul.f32 %v1887_v9, %v576_v34  ;;  %v849_v52 = vmul.f32 %v1890_v4, %v778_v35  ;;  %v782_v19 = vld [vmem:[%s1468_s29 + $0x7d8] sm:$0xff]  ;;  %v582_v38 = vld [vmem:[%s1468_s29 + $0x810] sm:$0xff] }
  0xc1   : > { %v309_v53 = vmul.f32 %v1876_v57, %v238_v36  ;;  %v711_v56 = vadd.f32 %v646_v39, %v509_v44  ;;  %v510_v58 = vadd.f32 %v445_v46, %v308_v45  ;;  %v446_v0 = vmul.f32 %v1880_v61, %v375_v41 }
  0xc2   : > { %v912_v55 = vadd.f32 %v847_v31, %v710_v43  ;;  %976 = vst [vmem:[%s1531_s23 + $0x1b8] sm:$0xff] %v911_v50  ;;  %v648_v62 = vmul.f32 %v1887_v9, %v577_v42  ;;  %v850_v63 = vmul.f32 %v1890_v4, %v779_v47  ;;  %v310_v1 = vmul.f32 %v1876_v57, %v239_v48  ;;  %v783_v31 = vld [vmem:[%s1468_s29 + $0x7f8] sm:$0xff] }
  0xc3   : > { %v447_v5 = vmul.f32 %v1880_v61, %v376_v49  ;;  %v913_v7 = vadd.f32 %v848_v40, %v711_v56  ;;  %v712_v8 = vadd.f32 %v647_v51, %v510_v58  ;;  %v511_v10 = vadd.f32 %v446_v0, %v309_v53  ;;  %v784_v43 = vld [vmem:[%s1468_s29 + $0x818] sm:$0xff] }
  0xc4   : > { %977 = vst [vmem:[%s1531_s23 + $0x1c0] sm:$0xff] %v912_v55  ;;  %v649_v11 = vmul.f32 %v1887_v9, %v578_v54  ;;  %v851_v15 = vmul.f32 %v1890_v4, %v780_v2  ;;  %v311_v16 = vmul.f32 %v1876_v57, %v240_v59  ;;  %v448_v17 = vmul.f32 %v1880_v61, %v377_v60 }
  0xc5   : > { %v512_v14 = vadd.f32 %v447_v5, %v310_v1  ;;  %978 = vst [vmem:[%s1531_s23 + $0x1c8] sm:$0xff] %v913_v7  ;;  %v914_v21 = vadd.f32 %v849_v52, %v712_v8  ;;  %v713_v22 = vadd.f32 %v648_v62, %v511_v10  ;;  %v650_v23 = vmul.f32 %v1887_v9, %v579_v3 }
  0xc6   : > { %v852_v24 = vmul.f32 %v1890_v4, %v781_v6  ;;  %v513_v28 = vadd.f32 %v448_v17, %v311_v16  ;;  %v312_v29 = vmul.f32 %v1876_v57, %v241_v12  ;;  %v449_v30 = vmul.f32 %v1880_v61, %v378_v13 }
  0xc7   : > { %v714_v27 = vadd.f32 %v649_v11, %v512_v14  ;;  %979 = vst [vmem:[%s1531_s23 + $0x1d0] sm:$0xff] %v914_v21  ;;  %v915_v34 = vadd.f32 %v850_v63, %v713_v22  ;;  %v651_v35 = vmul.f32 %v1887_v9, %v580_v18  ;;  %v853_v36 = vmul.f32 %v1890_v4, %v782_v19 }
  0xc8   : > { %v313_v37 = vmul.f32 %v1876_v57, %v242_v20  ;;  %v715_v40 = vadd.f32 %v650_v23, %v513_v28  ;;  %v514_v41 = vadd.f32 %v449_v30, %v312_v29  ;;  %v450_v42 = vmul.f32 %v1880_v61, %v379_v25 }
  0xc9   : > { %v916_v39 = vadd.f32 %v851_v15, %v714_v27  ;;  %980 = vst [vmem:[%s1531_s23 + $0x1d8] sm:$0xff] %v915_v34  ;;  %v652_v44 = vmul.f32 %v1887_v9, %v581_v26  ;;  %v854_v45 = vmul.f32 %v1890_v4, %v783_v31  ;;  %v314_v46 = vmul.f32 %v1876_v57, %v243_v32 }
  0xca   : > { %v451_v47 = vmul.f32 %v1880_v61, %v380_v33  ;;  %v917_v48 = vadd.f32 %v852_v24, %v715_v40  ;;  %v716_v49 = vadd.f32 %v651_v35, %v514_v41  ;;  %v515_v50 = vadd.f32 %v450_v42, %v313_v37 }
  0xcb   : > { %981 = vst [vmem:[%s1531_s23 + $0x1e0] sm:$0xff] %v916_v39  ;;  %v653_v51 = vmul.f32 %v1887_v9, %v582_v38  ;;  %v855_v53 = vmul.f32 %v1890_v4, %v784_v43 }
  0xcc   : > { %v516_v52 = vadd.f32 %v451_v47, %v314_v46  ;;  %982 = vst [vmem:[%s1531_s23 + $0x1e8] sm:$0xff] %v917_v48  ;;  %v918_v54 = vadd.f32 %v853_v36, %v716_v49  ;;  %v717_v55 = vadd.f32 %v652_v44, %v515_v50 }
  0xce   : > { %v718_v57 = vadd.f32 %v653_v51, %v516_v52  ;;  %983 = vst [vmem:[%s1531_s23 + $0x1f0] sm:$0xff] %v918_v54  ;;  %v919_v61 = vadd.f32 %v854_v45, %v717_v55 }
  0xd0   : > { %v920_v56 = vadd.f32 %v855_v53, %v718_v57  ;;  %984 = vst [vmem:[%s1531_s23 + $0x1f8] sm:$0xff] %v919_v61 }
  0xd2   : > { %985 = vst [vmem:[%s1531_s23 + $0x200] sm:$0xff] %v920_v56 }
  0xd3   : > { %1243 = shalt.err (!%p1240_p13)
}
  0xd4   : > { %s1244_s17 = scalar_lea.hbm %s2083_s7, 8320  ;;  %s1248_s3 = scalar_lea.hbm %s2133_s2, 16640 }
  0xd5   : > { %p1245_p7 = scmp.ne.s32.totalorder %s2083_s7, %s1244_s17  ;;  %p1249_p1 = scmp.lt.u32.totalorder %s2083_s7, %s2133_s2 }
  0xd6   : > { %p1250_p8 = scmp.lt.u32.totalorder %s1248_s3, %s1244_s17  ;;  %p1252_p9 = scmp.lt.u32.totalorder %s1244_s17, %s2083_s7 }
  0xd7   : > { %p1246_p3 = pnand %p1245_p7, %p2152_p10 }
  0xd8   : > { %p1251_p11 = por %p1250_p8, %p1249_p1 }
  0xd9   : > { %p1247_p12 = pneg %p1246_p3 }
  0xda   : > { %p1253_p2 = por %p1252_p9, %p1251_p11 }
  0xdc   : > { %p1254_p4 = pnand %p1253_p2, %p1247_p12 }
  0xde   : > { %1257 = shalt.err (!%p1254_p4)
}
  0xdf   : > { %s1307_s29 = smov 128   ;;  %s1308_s20 = smov 8  }
  0xe0   : > { %1113 = dma.vmem_to_hbm [thread:$0]  (%p2152_p10), %s2085_s30, 8320, %s2083_s7, %s987_s13, %s1307_s29, %s1307_s29, %s1308_s20  }
  0xe1 PF: > { %s1015_s23 = sand.u32 1, %s1288_s9   ;;  %p2153_p5 = scmp.ne.s32.totalorder %s2142_s22, 0 }
  0xe2   : > { %p2154_p0 = scmp.ge.s32.totalorder %s1300_s12, 2  ;;  %s1016_s28 = scalar_lea.sflag [#allocation4], %s1015_s23 }
  0xe4   : > { %p1124_p6 = pnand %p2154_p0, %p2153_p5 }
  0xe6   : > { %1283 = dma.done.wait (!%p1124_p6), %s1016_s28, 8320  }
  0xe7   : > { %1285 = vsyncadd (!%p1124_p6), %s1016_s28, 4294958976  ;;  %p16_p13 = scmp.ge.s32.totalorder %s1349_s15, 4   ;;  %s2155_s9 = smov %s1292_s10 }
  0xe8   : > { %s2156_s10 = smov %s1296_s11  ;;  %s2157_s11 = smov %s1361_s18 }
  0xe9   : > { %s2158_s12 = smov %s1349_s15  ;;  %18 = sbr.rel (!%p16_p13) target bundleno = 6 (0x6), region = 78 }
  0xf0   :  { %1021 = vsyncpa [#allocation3], 1 }
  0xf1   :  { %1023 = vsyncpa [#allocation3 + $0x1], 1 }
  0xf2   :  { %1024 = vsyncpa [#allocation6], 1 }
  0xf3   :  { %1026 = vsyncpa [#allocation6 + $0x1], 1 }
  0xf4   :  { %1027 = vsyncpa [#allocation4], 1 }
  0xf5   :  { %1029 = vsyncpa [#allocation4 + $0x1], 1 }

</bundles_post_ra>
